<compile_context>
chip_gen: v5e
topology: v5e:2x2
jax: 0.10.0
libtpu: 0.0.40
codegen_flags: <defaults>
</compile_context>

<pallas_src>
import functools

import jax
import jax.numpy as jnp
from jax.experimental import pallas as pl
from jax.experimental.pallas import tpu as pltpu

INPUT_DIM = 6
HIDDEN_DIM = 256
OUTPUT_DIM = 4
DEPTH = 6            # input layer + (DEPTH - 1) hidden layers + output layer
LANE = 128
DEFAULT_BATCH_TILE = 1024   # sweep 512-2048; keep <= ~2048 on v5e (16 MiB scoped VMEM)


def _round_up(x, m):
    return (x + m - 1) // m * m


def _mlp_kernel(n_hidden, out_cols,
                x_ref, w_in_ref, w_hid_ref, w_out_ref, b_ref, out_ref):
    """Fused DQN MLP forward for one (tb, in_dim) batch tile.

    w_in_ref : (in_dim, H)        bf16
    w_hid_ref: (n_hidden, H, H)   bf16  (all hidden-layer weights packed)
    w_out_ref: (H, out_cols)      bf16  (output weight padded to 128 lanes)
    b_ref    : (n_hidden + 2, H)  f32   (all biases packed, padded to H lanes)
    out_ref  : (tb, out_cols)     f32
    ReLU after every layer except the last, matching DQN_model.forward.
    """
    # Input layer: cast x straight to bf16 (no f32 round trip).
    h = x_ref[...].astype(jnp.bfloat16)
    acc = jnp.dot(h, w_in_ref[...], preferred_element_type=jnp.float32)
    h = jnp.maximum(acc + b_ref[0:1, :], 0.0).astype(jnp.bfloat16)

    # Hidden layers: bf16 operands on the MXU, f32 accumulate; ReLU fused with
    # the downcast so inter-layer activations stay bf16.
    for j in range(n_hidden):
        acc = jnp.dot(h, w_hid_ref[j], preferred_element_type=jnp.float32)
        h = jnp.maximum(acc + b_ref[j + 1:j + 2, :], 0.0).astype(jnp.bfloat16)

    # Output layer (no ReLU); lane-dense (tb, out_cols) f32 store.
    acc = jnp.dot(h, w_out_ref[...], preferred_element_type=jnp.float32)
    out_ref[...] = acc + b_ref[n_hidden + 1:n_hidden + 2, :out_cols]


def dqn_forward(x, weights, biases, *,
                batch_tile=DEFAULT_BATCH_TILE, return_padded=False):
    """Run the fused MLP Pallas kernel.

    x:       (B, INPUT_DIM) float32
    weights: list of (in, out) float32 arrays (len >= 3: input, hidden..., output)
    biases:  list of (out,)   float32 arrays
    returns: (B, OUTPUT_DIM) float32, or the (B, 128) padded slab if
             return_padded=True (consumer then indexes lanes [:, :OUTPUT_DIM]).
    """
    n_layers = len(weights)
    n_hidden = n_layers - 2
    assert n_hidden >= 1, "expects input + >=1 hidden + output layers"
    batch, in_dim = x.shape
    hidden_dim = weights[0].shape[1]
    out_dim = weights[-1].shape[1]

    # ---- parameter packing: 4 contiguous HBM arrays instead of 14 tiny DMAs ----
    out_pad = _round_up(max(out_dim, LANE), LANE)
    w_in = weights[0].astype(jnp.bfloat16)                                   # (in, H)
    w_hid = jnp.stack([w.astype(jnp.bfloat16) for w in weights[1:-1]])       # (nh, H, H)
    w_out = jnp.pad(weights[-1],
                    ((0, 0), (0, out_pad - out_dim))).astype(jnp.bfloat16)   # (H, 128)
    b_all = jnp.stack([
        jnp.pad(b.astype(jnp.float32), (0, hidden_dim - b.shape[0]))
        for b in biases
    ])                                                                       # (nl, H)

    # ---- batch tiling ----
    if batch > 16:
        # At least 2 grid steps so v7x's second TensorCore gets work; cap at
        # batch_tile so VMEM stays small and steps stay MXU-dense.
        tb = min(batch_tile, _round_up(pl.cdiv(batch, 2), 8))
    else:
        tb = _round_up(batch, 8)          # sublane-aligned tile for tiny batches
    batch_pad = _round_up(batch, tb)
    if batch_pad != batch:
        x = jnp.pad(x, ((0, batch_pad - batch), (0, 0)))
    grid = (batch_pad // tb,)

    kernel = functools.partial(_mlp_kernel, n_hidden, out_pad)
    out = pl.pallas_call(
        kernel,
        out_shape=jax.ShapeDtypeStruct((batch_pad, out_pad), jnp.float32),
        grid=grid,
        in_specs=[
            pl.BlockSpec((tb, in_dim), lambda i: (i, 0)),
            # Constant index maps -> params stay VMEM-resident across all tiles.
            pl.BlockSpec(w_in.shape, lambda i: (0, 0)),
            pl.BlockSpec(w_hid.shape, lambda i: (0, 0, 0)),
            pl.BlockSpec(w_out.shape, lambda i: (0, 0)),
            pl.BlockSpec(b_all.shape, lambda i: (0, 0)),
        ],
        out_specs=pl.BlockSpec((tb, out_pad), lambda i: (i, 0)),
        compiler_params=pltpu.CompilerParams(
            # Batch tiles are independent -> shard across v7x's 2 TensorCores.
            dimension_semantics=("parallel",),
        ),
    )(x, w_in, w_hid, w_out, b_all)

    if return_padded:
        return out if batch_pad == batch else out[:batch]
    return out[:batch, :out_dim]


def make_params(key):
    """Deterministic parameter init (uniform, PyTorch-Linear-like bounds)."""
    dims = [INPUT_DIM] + [HIDDEN_DIM] * DEPTH + [OUTPUT_DIM]
    weights, biases = [], []
    for i in range(len(dims) - 1):
        fan_in, fan_out = dims[i], dims[i + 1]
        key, kw, kb = jax.random.split(key, 3)
        bound = 1.0 / jnp.sqrt(fan_in)
        weights.append(
            jax.random.uniform(kw, (fan_in, fan_out), jnp.float32, -bound, bound)
        )
        biases.append(
            jax.random.uniform(kb, (fan_out,), jnp.float32, -bound, bound)
        )
    return weights, biases


def reference_forward_f32(x, weights, biases):
    """Pure-f32 reference (matches the PyTorch spec semantics)."""
    h = x
    n = len(weights)
    for i, (w, b) in enumerate(zip(weights, biases)):
        h = h @ w + b
        if i < n - 1:
            h = jnp.maximum(h, 0.0)
    return h


def reference_forward_bf16(x, weights, biases):
    """Matches the kernel's numerics: bf16 operands + inter-layer activations,
    f32 accumulate / bias / ReLU, final layer result in f32."""
    h = x.astype(jnp.bfloat16)
    n = len(weights)
    for i, (w, b) in enumerate(zip(weights, biases)):
        acc = jnp.dot(h, w.astype(jnp.bfloat16),
                      preferred_element_type=jnp.float32) + b.astype(jnp.float32)
        if i < n - 1:
            h = jnp.maximum(acc, 0.0).astype(jnp.bfloat16)
        else:
            h = acc
    return h


if __name__ == "__main__":
    key = jax.random.PRNGKey(0)
    key, kx = jax.random.split(key)

    # Small test shape consistent with the module (DQN action-value forward).
    batch = 8
    x = jax.random.normal(kx, (batch, INPUT_DIM), jnp.float32)
    weights, biases = make_params(key)

    out = jax.block_until_ready(dqn_forward(x, weights, biases))
    assert out.shape == (batch, OUTPUT_DIM)

    ref_matched = reference_forward_bf16(x, weights, biases)
    ref_f32 = reference_forward_f32(x, weights, biases)
    assert jnp.allclose(out, ref_matched, atol=1e-3, rtol=1e-3), \
        "mismatch vs matched-precision (bf16) reference"
    assert jnp.allclose(out, ref_f32, atol=2e-2, rtol=5e-2), \
        "mismatch vs f32 reference (beyond bf16 tolerance)"

    # Multi-tile grid path: >1 grid step, batch-row padding, tb capped at the
    # default tile, weights resident in VMEM across tiles.
    key, kb = jax.random.split(key)
    big_batch = 2 * DEFAULT_BATCH_TILE + 40
    xb = jax.random.normal(kb, (big_batch, INPUT_DIM), jnp.float32)
    out_big = jax.block_until_ready(dqn_forward(xb, weights, biases))
    assert out_big.shape == (big_batch, OUTPUT_DIM)
    assert jnp.allclose(out_big, reference_forward_bf16(xb, weights, biases),
                        atol=1e-3, rtol=1e-3)

    print("KERNEL_OK")
</pallas_src>

<mosaic_0001>
module attributes {stable_mosaic.version = 11 : i64} {
  func.func @_mlp_kernel(%arg0: i32, %arg1: memref<8x6xf32, #tpu.memory_space<vmem>>, %arg2: memref<6x256xbf16, #tpu.memory_space<vmem>>, %arg3: memref<5x256x256xbf16, #tpu.memory_space<vmem>>, %arg4: memref<256x128xbf16, #tpu.memory_space<vmem>>, %arg5: memref<7x256xf32, #tpu.memory_space<vmem>>, %arg6: memref<8x128xf32, #tpu.memory_space<vmem>>) attributes {dimension_semantics = [#tpu.dimension_semantics<parallel>], iteration_bounds = array<i64: 1>, scalar_prefetch = 0 : i64, scratch_operands = 0 : i64, tpu.core_type = #tpu.core_type<tc>, window_params = [{transform_indices = @transform_0, window_bounds = array<i64: 8, 6>}, {pipeline_mode = #tpu.pipeline_mode<synchronous>, transform_indices = @transform_1, window_bounds = array<i64: 6, 256>}, {pipeline_mode = #tpu.pipeline_mode<synchronous>, transform_indices = @transform_2, window_bounds = array<i64: 5, 256, 256>}, {pipeline_mode = #tpu.pipeline_mode<synchronous>, transform_indices = @transform_3, window_bounds = array<i64: 256, 128>}, {pipeline_mode = #tpu.pipeline_mode<synchronous>, transform_indices = @transform_4, window_bounds = array<i64: 7, 256>}, {transform_indices = @transform_5, window_bounds = array<i64: 8, 128>}]} {
    %c0 = arith.constant 0 : index
    %c0_0 = arith.constant 0 : index
    %0 = vector.load %arg1[%c0, %c0_0] : memref<8x6xf32, #tpu.memory_space<vmem>>, vector<8x6xf32>
    %1 = arith.truncf %0 : vector<8x6xf32> to vector<8x6xbf16>
    %c0_1 = arith.constant 0 : index
    %c0_2 = arith.constant 0 : index
    %2 = vector.load %arg2[%c0_1, %c0_2] : memref<6x256xbf16, #tpu.memory_space<vmem>>, vector<6x256xbf16>
    %cst = arith.constant dense<0.000000e+00> : vector<8x256xf32>
    %3 = tpu.matmul %1, %2, %cst {dimension_numbers = #tpu.dot_dimension_numbers<[1], [0], [0], [1], [0, 0, 1, 1], [], []>} : vector<8x6xbf16>, vector<6x256xbf16>, vector<8x256xf32> -> vector<8x256xf32>
    %c0_3 = arith.constant 0 : index
    %c0_4 = arith.constant 0 : index
    %4 = vector.load %arg5[%c0_3, %c0_4] : memref<7x256xf32, #tpu.memory_space<vmem>>, vector<1x256xf32>
    %5 = vector.broadcast %4 : vector<1x256xf32> to vector<8x256xf32>
    %6 = arith.addf %3, %5 : vector<8x256xf32>
    %cst_5 = arith.constant 0.000000e+00 : f32
    %7 = vector.broadcast %cst_5 : f32 to vector<8x256xf32>
    %8 = arith.maximumf %6, %7 : vector<8x256xf32>
    %9 = arith.truncf %8 : vector<8x256xf32> to vector<8x256xbf16>
    %c0_6 = arith.constant 0 : index
    %c0_7 = arith.constant 0 : index
    %c0_8 = arith.constant 0 : index
    %10 = vector.load %arg3[%c0_6, %c0_7, %c0_8] : memref<5x256x256xbf16, #tpu.memory_space<vmem>>, vector<1x256x256xbf16>
    %11 = vector.shape_cast %10 : vector<1x256x256xbf16> to vector<256x256xbf16>
    %cst_9 = arith.constant dense<0.000000e+00> : vector<8x256xf32>
    %12 = tpu.matmul %9, %11, %cst_9 {dimension_numbers = #tpu.dot_dimension_numbers<[1], [0], [0], [1], [0, 0, 1, 1], [], []>} : vector<8x256xbf16>, vector<256x256xbf16>, vector<8x256xf32> -> vector<8x256xf32>
    %c1 = arith.constant 1 : index
    %c0_10 = arith.constant 0 : index
    %13 = vector.load %arg5[%c1, %c0_10] : memref<7x256xf32, #tpu.memory_space<vmem>>, vector<1x256xf32>
    %14 = vector.broadcast %13 : vector<1x256xf32> to vector<8x256xf32>
    %15 = arith.addf %12, %14 : vector<8x256xf32>
    %cst_11 = arith.constant 0.000000e+00 : f32
    %16 = vector.broadcast %cst_11 : f32 to vector<8x256xf32>
    %17 = arith.maximumf %15, %16 : vector<8x256xf32>
    %18 = arith.truncf %17 : vector<8x256xf32> to vector<8x256xbf16>
    %c1_12 = arith.constant 1 : index
    %c0_13 = arith.constant 0 : index
    %c0_14 = arith.constant 0 : index
    %19 = vector.load %arg3[%c1_12, %c0_13, %c0_14] : memref<5x256x256xbf16, #tpu.memory_space<vmem>>, vector<1x256x256xbf16>
    %20 = vector.shape_cast %19 : vector<1x256x256xbf16> to vector<256x256xbf16>
    %cst_15 = arith.constant dense<0.000000e+00> : vector<8x256xf32>
    %21 = tpu.matmul %18, %20, %cst_15 {dimension_numbers = #tpu.dot_dimension_numbers<[1], [0], [0], [1], [0, 0, 1, 1], [], []>} : vector<8x256xbf16>, vector<256x256xbf16>, vector<8x256xf32> -> vector<8x256xf32>
    %c2 = arith.constant 2 : index
    %c0_16 = arith.constant 0 : index
    %22 = vector.load %arg5[%c2, %c0_16] : memref<7x256xf32, #tpu.memory_space<vmem>>, vector<1x256xf32>
    %23 = vector.broadcast %22 : vector<1x256xf32> to vector<8x256xf32>
    %24 = arith.addf %21, %23 : vector<8x256xf32>
    %cst_17 = arith.constant 0.000000e+00 : f32
    %25 = vector.broadcast %cst_17 : f32 to vector<8x256xf32>
    %26 = arith.maximumf %24, %25 : vector<8x256xf32>
    %27 = arith.truncf %26 : vector<8x256xf32> to vector<8x256xbf16>
    %c2_18 = arith.constant 2 : index
    %c0_19 = arith.constant 0 : index
    %c0_20 = arith.constant 0 : index
    %28 = vector.load %arg3[%c2_18, %c0_19, %c0_20] : memref<5x256x256xbf16, #tpu.memory_space<vmem>>, vector<1x256x256xbf16>
    %29 = vector.shape_cast %28 : vector<1x256x256xbf16> to vector<256x256xbf16>
    %cst_21 = arith.constant dense<0.000000e+00> : vector<8x256xf32>
    %30 = tpu.matmul %27, %29, %cst_21 {dimension_numbers = #tpu.dot_dimension_numbers<[1], [0], [0], [1], [0, 0, 1, 1], [], []>} : vector<8x256xbf16>, vector<256x256xbf16>, vector<8x256xf32> -> vector<8x256xf32>
    %c3 = arith.constant 3 : index
    %c0_22 = arith.constant 0 : index
    %31 = vector.load %arg5[%c3, %c0_22] : memref<7x256xf32, #tpu.memory_space<vmem>>, vector<1x256xf32>
    %32 = vector.broadcast %31 : vector<1x256xf32> to vector<8x256xf32>
    %33 = arith.addf %30, %32 : vector<8x256xf32>
    %cst_23 = arith.constant 0.000000e+00 : f32
    %34 = vector.broadcast %cst_23 : f32 to vector<8x256xf32>
    %35 = arith.maximumf %33, %34 : vector<8x256xf32>
    %36 = arith.truncf %35 : vector<8x256xf32> to vector<8x256xbf16>
    %c3_24 = arith.constant 3 : index
    %c0_25 = arith.constant 0 : index
    %c0_26 = arith.constant 0 : index
    %37 = vector.load %arg3[%c3_24, %c0_25, %c0_26] : memref<5x256x256xbf16, #tpu.memory_space<vmem>>, vector<1x256x256xbf16>
    %38 = vector.shape_cast %37 : vector<1x256x256xbf16> to vector<256x256xbf16>
    %cst_27 = arith.constant dense<0.000000e+00> : vector<8x256xf32>
    %39 = tpu.matmul %36, %38, %cst_27 {dimension_numbers = #tpu.dot_dimension_numbers<[1], [0], [0], [1], [0, 0, 1, 1], [], []>} : vector<8x256xbf16>, vector<256x256xbf16>, vector<8x256xf32> -> vector<8x256xf32>
    %c4 = arith.constant 4 : index
    %c0_28 = arith.constant 0 : index
    %40 = vector.load %arg5[%c4, %c0_28] : memref<7x256xf32, #tpu.memory_space<vmem>>, vector<1x256xf32>
    %41 = vector.broadcast %40 : vector<1x256xf32> to vector<8x256xf32>
    %42 = arith.addf %39, %41 : vector<8x256xf32>
    %cst_29 = arith.constant 0.000000e+00 : f32
    %43 = vector.broadcast %cst_29 : f32 to vector<8x256xf32>
    %44 = arith.maximumf %42, %43 : vector<8x256xf32>
    %45 = arith.truncf %44 : vector<8x256xf32> to vector<8x256xbf16>
    %c4_30 = arith.constant 4 : index
    %c0_31 = arith.constant 0 : index
    %c0_32 = arith.constant 0 : index
    %46 = vector.load %arg3[%c4_30, %c0_31, %c0_32] : memref<5x256x256xbf16, #tpu.memory_space<vmem>>, vector<1x256x256xbf16>
    %47 = vector.shape_cast %46 : vector<1x256x256xbf16> to vector<256x256xbf16>
    %cst_33 = arith.constant dense<0.000000e+00> : vector<8x256xf32>
    %48 = tpu.matmul %45, %47, %cst_33 {dimension_numbers = #tpu.dot_dimension_numbers<[1], [0], [0], [1], [0, 0, 1, 1], [], []>} : vector<8x256xbf16>, vector<256x256xbf16>, vector<8x256xf32> -> vector<8x256xf32>
    %c5 = arith.constant 5 : index
    %c0_34 = arith.constant 0 : index
    %49 = vector.load %arg5[%c5, %c0_34] : memref<7x256xf32, #tpu.memory_space<vmem>>, vector<1x256xf32>
    %50 = vector.broadcast %49 : vector<1x256xf32> to vector<8x256xf32>
    %51 = arith.addf %48, %50 : vector<8x256xf32>
    %cst_35 = arith.constant 0.000000e+00 : f32
    %52 = vector.broadcast %cst_35 : f32 to vector<8x256xf32>
    %53 = arith.maximumf %51, %52 : vector<8x256xf32>
    %54 = arith.truncf %53 : vector<8x256xf32> to vector<8x256xbf16>
    %c0_36 = arith.constant 0 : index
    %c0_37 = arith.constant 0 : index
    %55 = vector.load %arg4[%c0_36, %c0_37] : memref<256x128xbf16, #tpu.memory_space<vmem>>, vector<256x128xbf16>
    %cst_38 = arith.constant dense<0.000000e+00> : vector<8x128xf32>
    %56 = tpu.matmul %54, %55, %cst_38 {dimension_numbers = #tpu.dot_dimension_numbers<[1], [0], [0], [1], [0, 0, 1, 1], [], []>} : vector<8x256xbf16>, vector<256x128xbf16>, vector<8x128xf32> -> vector<8x128xf32>
    %c6 = arith.constant 6 : index
    %c0_39 = arith.constant 0 : index
    %57 = vector.load %arg5[%c6, %c0_39] : memref<7x256xf32, #tpu.memory_space<vmem>>, vector<1x128xf32>
    %58 = vector.broadcast %57 : vector<1x128xf32> to vector<8x128xf32>
    %59 = arith.addf %56, %58 : vector<8x128xf32>
    %c0_40 = arith.constant 0 : index
    %c0_41 = arith.constant 0 : index
    %60 = vector.load %arg6[%c0_40, %c0_41] : memref<8x128xf32, #tpu.memory_space<vmem>>, vector<8x128xf32>
    tpu.vector_store %arg6[%c0_40, %c0_41], %59 {strides = array<i32>} : memref<8x128xf32, #tpu.memory_space<vmem>>, vector<8x128xf32>,
    return
  }
  func.func @transform_0(%arg0: i32) -> (i32, i32) {
    %c0_i32 = arith.constant 0 : i32
    %c0_i32_0 = arith.constant 0 : i32
    return %arg0, %c0_i32 : i32, i32
  }
  func.func @transform_1(%arg0: i32) -> (i32, i32) {
    %c0_i32 = arith.constant 0 : i32
    %c0_i32_0 = arith.constant 0 : i32
    %c0_i32_1 = arith.constant 0 : i32
    return %c0_i32, %c0_i32_0 : i32, i32
  }
  func.func @transform_2(%arg0: i32) -> (i32, i32, i32) {
    %c0_i32 = arith.constant 0 : i32
    %c0_i32_0 = arith.constant 0 : i32
    %c0_i32_1 = arith.constant 0 : i32
    %c0_i32_2 = arith.constant 0 : i32
    return %c0_i32, %c0_i32_0, %c0_i32_1 : i32, i32, i32
  }
  func.func @transform_3(%arg0: i32) -> (i32, i32) {
    %c0_i32 = arith.constant 0 : i32
    %c0_i32_0 = arith.constant 0 : i32
    %c0_i32_1 = arith.constant 0 : i32
    return %c0_i32, %c0_i32_0 : i32, i32
  }
  func.func @transform_4(%arg0: i32) -> (i32, i32) {
    %c0_i32 = arith.constant 0 : i32
    %c0_i32_0 = arith.constant 0 : i32
    %c0_i32_1 = arith.constant 0 : i32
    return %c0_i32, %c0_i32_0 : i32, i32
  }
  func.func @transform_5(%arg0: i32) -> (i32, i32) {
    %c0_i32 = arith.constant 0 : i32
    %c0_i32_0 = arith.constant 0 : i32
    return %arg0, %c0_i32 : i32, i32
  }
}

</mosaic_0001>

<bundles_post_ra>
// kernel: tpu_custom_call.1
= control target key start
LH: loop header
LB: loop body
LE: loop exit
PB: predicated region body
PF: predicated region fallthrough
CT: control target
= control target key end

     0   :  { %10 = vsyncpa [#allocation3], 0  ;;  %s2709_s0 = inlined_call_operand.hbm [shape: f32[8,6], index: 0, kind: input, shape index: {}]   ;;  %s2710_s1 = inlined_call_operand.hbm [shape: bf16[6,256], index: 1, kind: input, shape index: {}]   ;;  %s2711_s2 = inlined_call_operand.hbm [shape: bf16[5,256,256], index: 2, kind: input, shape index: {}]   ;;  %s2712_s3 = inlined_call_operand.hbm [shape: bf16[256,128], index: 3, kind: input, shape index: {}]   ;;  %s2713_s4 = inlined_call_operand.hbm [shape: f32[7,256], index: 4, kind: input, shape index: {}]   ;;  %s2714_s5 = inlined_call_operand.hbm [shape: f32[8,128], index: 5, kind: output, shape index: {}]  }
   0x1   :  { %11 = vsyncpa [#allocation6], 0 }
   0x2   :  { %12 = vsyncpa [#allocation9], 0  ;;  %s30_s20 = sshll.u32 %s2710_s1, 4  ;;  %s31_s20 = int_to_ptr.hbm [resolvable:$true] %s30_s20 }
   0x3   :  { %13 = vsyncpa [#allocation4], 0  ;;  %s2647_s21 = smov [#allocation5]   ;;  %s53_s25 = sshll.u32 %s2712_s3, 4  ;;  %s54_s25 = int_to_ptr.hbm [resolvable:$true] %s53_s25 }
   0x4   :  { %s32_s22 = sshll.u32 %s2647_s21, 4  ;;  %s2648_s26 = smov [#allocation8]   ;;  %s33_s22 = int_to_ptr.vmem [resolvable:$true] %s32_s22 }
   0x5   :  { %35 = dma.hbm_to_vmem [thread:$0]  %s31_s20, 128, %s33_s22, [#allocation6]  }
   0x6   :  { %s55_s27 = sshll.u32 %s2648_s26, 4  ;;  %s2649_s28 = smov 64   ;;  %s56_s27 = int_to_ptr.vmem [resolvable:$true] %s55_s27 }
   0x7   :  { %s2650_s29 = smov 4   ;;  %s19_s1 = sshll.u32 %s2709_s0, 4  ;;  %s20_s1 = int_to_ptr.hbm [resolvable:$true] %s19_s1 }
   0x8   :  { %61 = dma.hbm_to_vmem [thread:$0]  %s54_s25, 2048, %s56_s27, [#allocation9], %s2649_s28, %s2649_s28, %s2650_s29  }
   0x9   :  { %s2651_s7 = smov [#allocation2]   ;;  %s40_s3 = sshll.u32 %s2711_s2, 4  ;;  %s41_s3 = int_to_ptr.hbm [resolvable:$true] %s40_s3 }
   0xa   :  { %s21_s8 = sshll.u32 %s2651_s7, 4  ;;  %s2652_s11 = smov [#allocation7]   ;;  %s22_s8 = int_to_ptr.vmem [resolvable:$true] %s21_s8 }
   0xb   :  { %24 = dma.hbm_to_vmem [thread:$0]  %s20_s1, 128, %s22_s8, [#allocation3]  }
   0xc   :  { %s42_s12 = sshll.u32 %s2652_s11, 4  ;;  %s2653_s13 = smov 128   ;;  %s43_s12 = int_to_ptr.vmem [resolvable:$true] %s42_s12 }
   0xd   :  { %s2654_s14 = smov 8   ;;  %s67_s0 = sshll.u32 %s2713_s4, 4  ;;  %s68_s0 = int_to_ptr.hbm [resolvable:$true] %s67_s0 }
   0xe   :  { %48 = dma.hbm_to_vmem [thread:$0]  %s41_s3, 20480, %s43_s12, [#allocation6], %s2653_s13, %s2653_s13, %s2654_s14  }
   0xf   :  { %s2655_s17 = smov [#allocation10]  }
  0x10   :  { %s69_s18 = sshll.u32 %s2655_s17, 4  ;;  %s70_s18 = int_to_ptr.vmem [resolvable:$true] %s69_s18 }
  0x11   :  { %72 = dma.hbm_to_vmem [thread:$0]  %s68_s0, 256, %s70_s18, [#allocation9]  }
  0x12   :  { %2639 = dma.done.wait [#allocation3], 128  }
  0x13   :  { %2640 = vsyncadd [#allocation3], 4294967168 }
  0x14   :  { %2641 = dma.done.wait [#allocation6], 20608  }
  0x15   :  { %2642 = vsyncadd [#allocation6], 4294946688 }
  0x16   :  { %2643 = dma.done.wait [#allocation9], 2304  }
  0x17   :  { %2644 = vsyncadd [#allocation9], 4294964992  ;;  %vm112_vm0 = vcmask 1042432   ;;  %v96_v0 = vld [vmem:[#allocation5] sm:$0x77]  ;;  %v94_v1 = vld [vmem:[#allocation2] sm:$0xff] }
  0x18   :  { %vm108_vm1 = vcmask 48128   ;;  %v1663_v2 = vld [vmem:[#allocation7 + $0x70] sm:$0xf]  ;;  %v104_v3 = vunpack.c.l.b16 %v96_v0  ;;  %v105_v4 = vunpack.c.h.b16 %v96_v0  ;;  %v2324_v5 = vld [vmem:[#allocation7 + $0x74] sm:$0xf0]  ;;  %v95_v26 = vpack.c.bf16 %v94_v1, %v94_v1  ;;  %s2656_s2 = smov [#allocation11]  }
  0x19   :  { %v1727_v6 = vld [vmem:[#allocation7 + $0xf0] sm:$0xf]  ;;  %v2340_v7 = vld [vmem:[#allocation7 + $0xf4] sm:$0xf0]  ;;  %v1664_v8 = vor.u32 %v2324_v5, %v1663_v2  ;;  %v2323_v10 = vld [vmem:[#allocation7 + $0x74] sm:$0xf] }
  0x1a   :  { %v1728_v9 = vor.u32 %v2340_v7, %v1727_v6  ;;  %v1665_v11 = vld [vmem:[#allocation7 + $0x78] sm:$0xf0]  ;;  %v2339_v12 = vld [vmem:[#allocation7 + $0xf4] sm:$0xf]  ;;  %v106_v13 = vpack.c.b16 %v104_v3, %v104_v3  ;;  %v107_v14 = vpack.c.b16 %v105_v4, %v105_v4  ;;  %v1655_v17 = vld [vmem:[#allocation7 + $0x60] sm:$0xf] }
  0x1b   :  { %v1668_v15 = vor.u32 %v2323_v10, %v1665_v11  ;;  %v1729_v16 = vld [vmem:[#allocation7 + $0xf8] sm:$0xf0]  ;;  %v2322_v18 = vld [vmem:[#allocation7 + $0x64] sm:$0xf0]  ;;  %348 = vmatpush.bf16.msra.mxu2 %v1664_v8  ;;  %v1719_v21 = vld [vmem:[#allocation7 + $0xe0] sm:$0xf] }
  0x1c   :  { %361 = vmatpush.bf16.msra.mxu3 %v1728_v9  ;;  %v1732_v19 = vor.u32 %v2339_v12, %v1729_v16  ;;  %v1656_v20 = vor.u32 %v2322_v18, %v1655_v17  ;;  %v2338_v22 = vld [vmem:[#allocation7 + $0xe4] sm:$0xf0]  ;;  %v2321_v23 = vld [vmem:[#allocation7 + $0x64] sm:$0xf]  ;;  %v114_v24 = vsel %vm112_vm0, %v106_v13, 0  ;;  %v117_v25 = vsel %vm112_vm0, %v107_v14, 0 }
  0x1d   :  { %v1720_v27 = vor.u32 %v2338_v22, %v1719_v21  ;;  %v1657_v28 = vld [vmem:[#allocation7 + $0x68] sm:$0xf0]  ;;  %v2337_v29 = vld [vmem:[#allocation7 + $0xe4] sm:$0xf]  ;;  %126 = vmatpush.bf16.msra.mxu0 %v114_v24  ;;  %139 = vmatpush.bf16.msra.mxu1 %v117_v25  ;;  %v1647_v31 = vld [vmem:[#allocation7 + $0x50] sm:$0xf] }
  0x1e   :  { %v1721_v30 = vld [vmem:[#allocation7 + $0xe8] sm:$0xf0]  ;;  %v2320_v32 = vld [vmem:[#allocation7 + $0x54] sm:$0xf0]  ;;  %v1660_v33 = vor.u32 %v2321_v23, %v1657_v28  ;;  %v1711_v35 = vld [vmem:[#allocation7 + $0xd0] sm:$0xf] }
  0x1f   :  { %v1724_v34 = vor.u32 %v2337_v29, %v1721_v30  ;;  %v2336_v36 = vld [vmem:[#allocation7 + $0xd4] sm:$0xf0]  ;;  %v2319_v37 = vld [vmem:[#allocation7 + $0x54] sm:$0xf]  ;;  %349 = vmatpush.bf16.msra.mxu2 %v1656_v20  ;;  %v1648_v38 = vor.u32 %v2320_v32, %v1647_v31  ;;  %v1649_v40 = vld [vmem:[#allocation7 + $0x58] sm:$0xf0] }
  0x20   :  { %362 = vmatpush.bf16.msra.mxu3 %v1720_v27  ;;  %v1712_v39 = vor.u32 %v2336_v36, %v1711_v35  ;;  %v2335_v41 = vld [vmem:[#allocation7 + $0xd4] sm:$0xf]  ;;  %v1713_v42 = vld [vmem:[#allocation7 + $0xd8] sm:$0xf0]  ;;  %1603 = vmatmul.msk.bf16.vlgmr.msra.gmra.mxu0 %vm108_vm1, %v95_v26  ;;  %v1639_v43 = vld [vmem:[#allocation7 + $0x40] sm:$0xf]  ;;  %v1652_v47 = vor.u32 %v2319_v37, %v1649_v40 }
  0x21   :  { %374 = vmatpush.bf16.msrb.mxu0 %v1668_v15  ;;  %387 = vmatpush.bf16.msrb.mxu1 %v1732_v19  ;;  %v2318_v44 = vld [vmem:[#allocation7 + $0x44] sm:$0xf0]  ;;  %v1703_v45 = vld [vmem:[#allocation7 + $0xc0] sm:$0xf]  ;;  %v1716_v48 = vor.u32 %v2335_v41, %v1713_v42  ;;  %v2317_v49 = vld [vmem:[#allocation7 + $0x44] sm:$0xf] }
  0x22   :  { %1604 = vmatmul.msk.bf16.vlgmr.msra.gmra.mxu1 %vm108_vm1, %v95_v26  ;;  %v2334_v46 = vld [vmem:[#allocation7 + $0xc4] sm:$0xf0]  ;;  %v1641_v50 = vld [vmem:[#allocation7 + $0x48] sm:$0xf0]  ;;  %v1640_v51 = vor.u32 %v2318_v44, %v1639_v43  ;;  %v2333_v53 = vld [vmem:[#allocation7 + $0xc4] sm:$0xf] }
  0x23   :  { %350 = vmatpush.bf16.msra.mxu2 %v1648_v38  ;;  %v1704_v52 = vor.u32 %v2334_v46, %v1703_v45  ;;  %v1705_v54 = vld [vmem:[#allocation7 + $0xc8] sm:$0xf0]  ;;  %v1631_v55 = vld [vmem:[#allocation7 + $0x30] sm:$0xf]  ;;  %v2316_v56 = vld [vmem:[#allocation7 + $0x34] sm:$0xf0]  ;;  %v1644_v59 = vor.u32 %v2317_v49, %v1641_v50 }
  0x24   :  { %363 = vmatpush.bf16.msra.mxu3 %v1712_v39  ;;  %v1695_v57 = vld [vmem:[#allocation7 + $0xb0] sm:$0xf]  ;;  %v2332_v58 = vld [vmem:[#allocation7 + $0xb4] sm:$0xf0]  ;;  %v1708_v60 = vor.u32 %v2333_v53, %v1705_v54  ;;  %v2315_v61 = vld [vmem:[#allocation7 + $0x34] sm:$0xf]  ;;  %v1632_v63 = vor.u32 %v2316_v56, %v1631_v55 }
  0x25   :  { %375 = vmatpush.bf16.msrb.mxu0 %v1660_v33  ;;  %388 = vmatpush.bf16.msrb.mxu1 %v1724_v34  ;;  %v1633_v62 = vld [vmem:[#allocation7 + $0x38] sm:$0xf0]  ;;  %v1696_v0 = vor.u32 %v2332_v58, %v1695_v57  ;;  %v2331_v1 = vld [vmem:[#allocation7 + $0xb4] sm:$0xf]  ;;  %v1623_v3 = vld [vmem:[#allocation7 + $0x20] sm:$0xf] }
  0x26   :  { %v1697_v2 = vld [vmem:[#allocation7 + $0xb8] sm:$0xf0]  ;;  %v2314_v4 = vld [vmem:[#allocation7 + $0x24] sm:$0xf0]  ;;  %v1687_v5 = vld [vmem:[#allocation7 + $0xa0] sm:$0xf]  ;;  %v1636_v7 = vor.u32 %v2315_v61, %v1633_v62 }
  0x27   :  { %351 = vmatpush.bf16.msra.mxu2 %v1640_v51  ;;  %v2330_v6 = vld [vmem:[#allocation7 + $0xa4] sm:$0xf0]  ;;  %v1700_v8 = vor.u32 %v2331_v1, %v1697_v2  ;;  %v2313_v9 = vld [vmem:[#allocation7 + $0x24] sm:$0xf]  ;;  %v1624_v10 = vor.u32 %v2314_v4, %v1623_v3  ;;  %v1625_v12 = vld [vmem:[#allocation7 + $0x28] sm:$0xf0] }
  0x28   :  { %364 = vmatpush.bf16.msra.mxu3 %v1704_v52  ;;  %v1688_v11 = vor.u32 %v2330_v6, %v1687_v5  ;;  %v2329_v13 = vld [vmem:[#allocation7 + $0xa4] sm:$0xf]  ;;  %v1689_v14 = vld [vmem:[#allocation7 + $0xa8] sm:$0xf0]  ;;  %v1628_v15 = vor.u32 %v2313_v9, %v1625_v12  ;;  %v1615_v17 = vld [vmem:[#allocation7 + $0x10] sm:$0xf] }
  0x29   :  { %376 = vmatpush.bf16.msrb.mxu0 %v1652_v47  ;;  %389 = vmatpush.bf16.msrb.mxu1 %v1716_v48  ;;  %v1692_v16 = vor.u32 %v2329_v13, %v1689_v14  ;;  %v2312_v18 = vld [vmem:[#allocation7 + $0x14] sm:$0xf0]  ;;  %v1679_v19 = vld [vmem:[#allocation7 + $0x90] sm:$0xf]  ;;  %v2311_v22 = vld [vmem:[#allocation7 + $0x14] sm:$0xf] }
  0x2a   :  { %v1616_v20 = vor.u32 %v2312_v18, %v1615_v17  ;;  %v2328_v21 = vld [vmem:[#allocation7 + $0x94] sm:$0xf0]  ;;  %v1617_v23 = vld [vmem:[#allocation7 + $0x18] sm:$0xf0]  ;;  %v2327_v26 = vld [vmem:[#allocation7 + $0x94] sm:$0xf] }
  0x2b   :  { %352 = vmatpush.bf16.msra.mxu2 %v1632_v63  ;;  %v1680_v24 = vor.u32 %v2328_v21, %v1679_v19  ;;  %v1620_v25 = vor.u32 %v2311_v22, %v1617_v23  ;;  %v1681_v27 = vld [vmem:[#allocation7 + $0x98] sm:$0xf0]  ;;  %v1607_v29 = vld [vmem:[#allocation7] sm:$0xf]  ;;  %v2310_v30 = vld [vmem:[#allocation7 + $0x4] sm:$0xf0] }
  0x2c   :  { %365 = vmatpush.bf16.msra.mxu3 %v1696_v0  ;;  %v1684_v28 = vor.u32 %v2327_v26, %v1681_v27  ;;  %v1671_v31 = vld [vmem:[#allocation7 + $0x80] sm:$0xf]  ;;  %v1608_v32 = vor.u32 %v2310_v30, %v1607_v29  ;;  %v2326_v33 = vld [vmem:[#allocation7 + $0x84] sm:$0xf0]  ;;  %v2309_v34 = vld [vmem:[#allocation7 + $0x4] sm:$0xf] }
  0x2d   :  { %377 = vmatpush.bf16.msrb.mxu0 %v1644_v59  ;;  %390 = vmatpush.bf16.msrb.mxu1 %v1708_v60  ;;  %v1609_v35 = vld [vmem:[#allocation7 + $0x8] sm:$0xf0]  ;;  %v1672_v36 = vor.u32 %v2326_v33, %v1671_v31  ;;  %v2325_v38 = vld [vmem:[#allocation7 + $0x84] sm:$0xf]  ;;  %v1855_v41 = vld [vmem:[#allocation7 + $0x1f0] sm:$0xf] }
  0x2e   :  { %v1612_v37 = vor.u32 %v2309_v34, %v1609_v35  ;;  %v1673_v39 = vld [vmem:[#allocation7 + $0x88] sm:$0xf0]  ;;  %v2372_v42 = vld [vmem:[#allocation7 + $0x1f4] sm:$0xf0]  ;;  %v2371_v43 = vld [vmem:[#allocation7 + $0x1f4] sm:$0xf] }
  0x2f   :  { %353 = vmatpush.bf16.msra.mxu2 %v1624_v10  ;;  %v1676_v40 = vor.u32 %v2325_v38, %v1673_v39  ;;  %v1856_v44 = vor.u32 %v2372_v42, %v1855_v41  ;;  %v1857_v45 = vld [vmem:[#allocation7 + $0x1f8] sm:$0xf0]  ;;  %v1847_v46 = vld [vmem:[#allocation7 + $0x1e0] sm:$0xf]  ;;  %v2370_v47 = vld [vmem:[#allocation7 + $0x1e4] sm:$0xf0] }
  0x30   :  { %366 = vmatpush.bf16.msra.mxu3 %v1688_v11  ;;  %v1860_v48 = vor.u32 %v2371_v43, %v1857_v45  ;;  %v2369_v49 = vld [vmem:[#allocation7 + $0x1e4] sm:$0xf]  ;;  %v1849_v50 = vld [vmem:[#allocation7 + $0x1e8] sm:$0xf0]  ;;  %v1791_v51 = vld [vmem:[#allocation7 + $0x170] sm:$0xf]  ;;  %v1848_v52 = vor.u32 %v2370_v47, %v1847_v46 }
  0x31   :  { %378 = vmatpush.bf16.msrb.mxu0 %v1636_v7  ;;  %391 = vmatpush.bf16.msrb.mxu1 %v1700_v8  ;;  %v2356_v53 = vld [vmem:[#allocation7 + $0x174] sm:$0xf0]  ;;  %v2355_v54 = vld [vmem:[#allocation7 + $0x174] sm:$0xf]  ;;  %v1793_v55 = vld [vmem:[#allocation7 + $0x178] sm:$0xf0]  ;;  %v1852_v56 = vor.u32 %v2369_v49, %v1849_v50 }
  0x32   :  { %v1792_v57 = vor.u32 %v2356_v53, %v1791_v51  ;;  %v1796_v58 = vor.u32 %v2355_v54, %v1793_v55  ;;  %v1839_v59 = vld [vmem:[#allocation7 + $0x1d0] sm:$0xf]  ;;  %v2368_v60 = vld [vmem:[#allocation7 + $0x1d4] sm:$0xf0]  ;;  %v2367_v61 = vld [vmem:[#allocation7 + $0x1d4] sm:$0xf] }
  0x33   :  { %354 = vmatpush.bf16.msra.mxu2 %v1616_v20  ;;  %v1841_v62 = vld [vmem:[#allocation7 + $0x1d8] sm:$0xf0]  ;;  %v1783_v63 = vld [vmem:[#allocation7 + $0x160] sm:$0xf]  ;;  %v2354_v0 = vld [vmem:[#allocation7 + $0x164] sm:$0xf0]  ;;  %v1840_v4 = vor.u32 %v2368_v60, %v1839_v59 }
  0x34   :  { %367 = vmatpush.bf16.msra.mxu3 %v1680_v24  ;;  %v1784_v1 = vor.u32 %v2354_v0, %v1783_v63  ;;  %v2353_v2 = vld [vmem:[#allocation7 + $0x164] sm:$0xf]  ;;  %v1785_v3 = vld [vmem:[#allocation7 + $0x168] sm:$0xf0]  ;;  %v1831_v6 = vld [vmem:[#allocation7 + $0x1c0] sm:$0xf]  ;;  %v1844_v8 = vor.u32 %v2367_v61, %v1841_v62 }
  0x35   :  { %379 = vmatpush.bf16.msrb.mxu0 %v1628_v15  ;;  %392 = vmatpush.bf16.msrb.mxu1 %v1692_v16  ;;  %v1788_v5 = vor.u32 %v2353_v2, %v1785_v3  ;;  %v2366_v7 = vld [vmem:[#allocation7 + $0x1c4] sm:$0xf0]  ;;  %v1775_v9 = vld [vmem:[#allocation7 + $0x150] sm:$0xf]  ;;  %v2352_v10 = vld [vmem:[#allocation7 + $0x154] sm:$0xf0] }
  0x36   :  { %v2351_v11 = vld [vmem:[#allocation7 + $0x154] sm:$0xf]  ;;  %v2365_v12 = vld [vmem:[#allocation7 + $0x1c4] sm:$0xf]  ;;  %v1833_v13 = vld [vmem:[#allocation7 + $0x1c8] sm:$0xf0]  ;;  %v1776_v15 = vor.u32 %v2352_v10, %v1775_v9  ;;  %v1832_v18 = vor.u32 %v2366_v7, %v1831_v6 }
  0x37   :  { %355 = vmatpush.bf16.msra.mxu2 %v1608_v32  ;;  %v1777_v14 = vld [vmem:[#allocation7 + $0x158] sm:$0xf0]  ;;  %v1767_v17 = vld [vmem:[#allocation7 + $0x140] sm:$0xf]  ;;  %v2350_v19 = vld [vmem:[#allocation7 + $0x144] sm:$0xf0]  ;;  %v1836_v22 = vor.u32 %v2365_v12, %v1833_v13 }
  0x38   :  { %368 = vmatpush.bf16.msra.mxu3 %v1672_v36  ;;  %v1780_v16 = vor.u32 %v2351_v11, %v1777_v14  ;;  %v2349_v20 = vld [vmem:[#allocation7 + $0x144] sm:$0xf]  ;;  %v1769_v21 = vld [vmem:[#allocation7 + $0x148] sm:$0xf0]  ;;  %v1823_v23 = vld [vmem:[#allocation7 + $0x1b0] sm:$0xf]  ;;  %v1768_v27 = vor.u32 %v2350_v19, %v1767_v17 }
  0x39   :  { %380 = vmatpush.bf16.msrb.mxu0 %v1620_v25  ;;  %393 = vmatpush.bf16.msrb.mxu1 %v1684_v28  ;;  %v2364_v24 = vld [vmem:[#allocation7 + $0x1b4] sm:$0xf0]  ;;  %v2363_v25 = vld [vmem:[#allocation7 + $0x1b4] sm:$0xf]  ;;  %v1825_v26 = vld [vmem:[#allocation7 + $0x1b8] sm:$0xf0]  ;;  %v1772_v28 = vor.u32 %v2349_v20, %v1769_v21 }
  0x3a   :  { %v1824_v29 = vor.u32 %v2364_v24, %v1823_v23  ;;  %v1828_v30 = vor.u32 %v2363_v25, %v1825_v26  ;;  %v1815_v31 = vld [vmem:[#allocation7 + $0x1a0] sm:$0xf]  ;;  %v2362_v32 = vld [vmem:[#allocation7 + $0x1a4] sm:$0xf0]  ;;  %v2361_v33 = vld [vmem:[#allocation7 + $0x1a4] sm:$0xf] }
  0x3b   :  { %604 = vmatpush.bf16.msrb.mxu2 %v1792_v57  ;;  %v1817_v34 = vld [vmem:[#allocation7 + $0x1a8] sm:$0xf0]  ;;  %v97_v35 = vld [vmem:[#allocation10] ss:$8 sm:$0x3]  ;;  %v1816_v36 = vor.u32 %v2362_v32, %v1815_v31  ;;  %s1589_s4 = sshll.u32 %s2656_s2, 4  ;;  %s1590_s4 = int_to_ptr.vmem [resolvable:$true] %s1589_s4 }
  0x3c   :  { %617 = vmatpush.bf16.msrb.mxu3 %v1856_v44  ;;  %v99_v38 = vperm.slane %v97_v35, 0  ;;  %v100_v39 = vperm.slane %v97_v35, 1  ;;  %v1759_v50 = vld [vmem:[#allocation7 + $0x130] sm:$0xf]  ;;  %v2348_v51 = vld [vmem:[#allocation7 + $0x134] sm:$0xf0] }
  0x3d   :  { %381 = vmatpush.bf16.msrb.mxu0 %v1612_v37  ;;  %394 = vmatpush.bf16.msrb.mxu1 %v1676_v40  ;;  %v1820_v37 = vor.u32 %v2361_v33, %v1817_v34  ;;  %v1760_v53 = vor.u32 %v2348_v51, %v1759_v50  ;;  %v1761_v54 = vld [vmem:[#allocation7 + $0x138] sm:$0xf0]  ;;  %v2360_v57 = vld [vmem:[#allocation7 + $0x194] sm:$0xf0]  ;;  %v1751_v62 = vld [vmem:[#allocation7 + $0x120] sm:$0xf] }
  0x3e   :  { %v1809_v60 = vld [vmem:[#allocation7 + $0x198] sm:$0xf0]  ;;  %v2346_v63 = vld [vmem:[#allocation7 + $0x124] sm:$0xf0]  ;;  %v2345_v0 = vld [vmem:[#allocation7 + $0x124] sm:$0xf] }
  0x3f   :  { %605 = vmatpush.bf16.msrb.mxu2 %v1784_v1  ;;  %v1752_v1 = vor.u32 %v2346_v63, %v1751_v62  ;;  %v1753_v2 = vld [vmem:[#allocation7 + $0x128] sm:$0xf0]  ;;  %v2357_v6 = vld [vmem:[#allocation7 + $0x184] sm:$0xf]  ;;  %v1743_v10 = vld [vmem:[#allocation7 + $0x110] sm:$0xf] }
  0x40   :  { %618 = vmatpush.bf16.msrb.mxu3 %v1848_v52  ;;  %v2347_v52 = vld [vmem:[#allocation7 + $0x134] sm:$0xf]  ;;  %v1756_v3 = vor.u32 %v2345_v0, %v1753_v2  ;;  %v2344_v11 = vld [vmem:[#allocation7 + $0x114] sm:$0xf0]  ;;  %v1745_v14 = vld [vmem:[#allocation7 + $0x118] sm:$0xf0] }
  0x41   :  { %643 = vmatpush.bf16.msra.mxu1 %v1860_v48  ;;  %630 = vmatpush.bf16.msra.mxu0 %v1796_v58  ;;  %v1764_v55 = vor.u32 %v2347_v52, %v1761_v54  ;;  %v2359_v58 = vld [vmem:[#allocation7 + $0x194] sm:$0xf]  ;;  %v1744_v12 = vor.u32 %v2344_v11, %v1743_v10  ;;  %v2342_v17 = vld [vmem:[#allocation7 + $0x104] sm:$0xf0]  ;;  %v1737_v20 = vld [vmem:[#allocation7 + $0x108] sm:$0xf0] }
  0x42   :  { %v1812_v61 = vor.u32 %v2359_v58, %v1809_v60  ;;  %v2343_v13 = vld [vmem:[#allocation7 + $0x114] sm:$0xf]  ;;  %v2404_v23 = vld [vmem:[#allocation7 + $0x2f4] sm:$0xf0]  ;;  %v1985_v26 = vld [vmem:[#allocation7 + $0x2f8] sm:$0xf0] }
  0x43   :  { %606 = vmatpush.bf16.msrb.mxu2 %v1776_v15  ;;  %v1748_v15 = vor.u32 %v2343_v13, %v1745_v14  ;;  %v2403_v24 = vld [vmem:[#allocation7 + $0x2f4] sm:$0xf]  ;;  %v1977_v31 = vld [vmem:[#allocation7 + $0x2e8] sm:$0xf0]  ;;  %v1919_v32 = vld [vmem:[#allocation7 + $0x270] sm:$0xf] }
  0x44   :  { %619 = vmatpush.bf16.msrb.mxu3 %v1840_v4  ;;  %v1799_v4 = vld [vmem:[#allocation7 + $0x180] sm:$0xf]  ;;  %v2388_v34 = vld [vmem:[#allocation7 + $0x274] sm:$0xf0]  ;;  %v2387_v35 = vld [vmem:[#allocation7 + $0x274] sm:$0xf] }
  0x45   :  { %644 = vmatpush.bf16.msra.mxu1 %v1852_v56  ;;  %631 = vmatpush.bf16.msra.mxu0 %v1788_v5  ;;  %v1807_v56 = vld [vmem:[#allocation7 + $0x190] sm:$0xf]  ;;  %v2358_v5 = vld [vmem:[#allocation7 + $0x184] sm:$0xf0]  ;;  %v1959_v51 = vld [vmem:[#allocation7 + $0x2c0] sm:$0xf] }
  0x46   :  { %v1808_v59 = vor.u32 %v2360_v57, %v1807_v56  ;;  %v1800_v7 = vor.u32 %v2358_v5, %v1799_v4  ;;  %v2398_v52 = vld [vmem:[#allocation7 + $0x2c4] sm:$0xf0]  ;;  %v1903_v54 = vld [vmem:[#allocation7 + $0x250] sm:$0xf]  ;;  %v2383_v56 = vld [vmem:[#allocation7 + $0x254] sm:$0xf] }
  0x47   :  { %607 = vmatpush.bf16.msrb.mxu2 %v1768_v27  ;;  %v1975_v27 = vld [vmem:[#allocation7 + $0x2e0] sm:$0xf]  ;;  %v2397_v57 = vld [vmem:[#allocation7 + $0x2c4] sm:$0xf]  ;;  %v1961_v58 = vld [vmem:[#allocation7 + $0x2c8] sm:$0xf0]  ;;  %v1960_v62 = vor.u32 %v2398_v52, %v1959_v51 }
  0x48   :  { %620 = vmatpush.bf16.msrb.mxu3 %v1832_v18  ;;  %v2341_v18 = vld [vmem:[#allocation7 + $0x104] sm:$0xf]  ;;  %v182_v63 = vld [vmem:[#allocation10 + $0x1] ss:$8 sm:$0x3]  ;;  %v1964_v0 = vor.u32 %v2397_v57, %v1961_v58  ;;  %s1591_s21 = sshll.u32 %s2714_s5, 4  ;;  %s1592_s21 = int_to_ptr.hbm [resolvable:$true] %s1591_s21 }
  0x49   :  { %645 = vmatpush.bf16.msra.mxu1 %v1844_v8  ;;  %632 = vmatpush.bf16.msra.mxu0 %v1780_v16  ;;  %v1801_v8 = vld [vmem:[#allocation7 + $0x188] sm:$0xf0]  ;;  %v1735_v16 = vld [vmem:[#allocation7 + $0x100] sm:$0xf]  ;;  %v1740_v21 = vor.u32 %v2341_v18, %v1737_v20  ;;  %v184_v5 = vperm.slane %v182_v63, 0 }
  0x4a   :  { %v1804_v9 = vor.u32 %v2357_v6, %v1801_v8  ;;  %v1736_v19 = vor.u32 %v2342_v17, %v1735_v16  ;;  %v2396_v20 = vld [vmem:[#allocation7 + $0x2b4] sm:$0xf0]  ;;  %v2377_v51 = vld [vmem:[#allocation7 + $0x224] sm:$0xf] }
  0x4b   :  { %608 = vmatpush.bf16.msrb.mxu2 %v1760_v53  ;;  %v2389_v57 = vld [vmem:[#allocation7 + $0x284] sm:$0xf] }
  0x4c   :  { %621 = vmatpush.bf16.msrb.mxu3 %v1824_v29  ;;  %v1988_v29 = vor.u32 %v2403_v24, %v1985_v26  ;;  %v2382_v26 = vld [vmem:[#allocation7 + $0x244] sm:$0xf0] }
  0x4d   :  { %646 = vmatpush.bf16.msra.mxu1 %v1836_v22  ;;  %633 = vmatpush.bf16.msra.mxu0 %v1772_v28  ;;  %v1983_v22 = vld [vmem:[#allocation7 + $0x2f0] sm:$0xf]  ;;  %v2402_v28 = vld [vmem:[#allocation7 + $0x2e4] sm:$0xf0] }
  0x4e   :  { %v1984_v25 = vor.u32 %v2404_v23, %v1983_v22  ;;  %v1976_v33 = vor.u32 %v2402_v28, %v1975_v27  ;;  %v1953_v23 = vld [vmem:[#allocation7 + $0x2b8] sm:$0xf0]  ;;  %v2381_v27 = vld [vmem:[#allocation7 + $0x244] sm:$0xf] }
  0x4f   :  { %609 = vmatpush.bf16.msrb.mxu2 %v1752_v1  ;;  %v185_v1 = vperm.slane %v182_v63, 1 }
  0x50   :  { %622 = vmatpush.bf16.msrb.mxu3 %v1816_v36  ;;  %v1921_v36 = vld [vmem:[#allocation7 + $0x278] sm:$0xf0] }
  0x51   :  { %647 = vmatpush.bf16.msra.mxu1 %v1828_v30  ;;  %634 = vmatpush.bf16.msra.mxu0 %v1764_v55  ;;  %v2401_v30 = vld [vmem:[#allocation7 + $0x2e4] sm:$0xf]  ;;  %v2384_v55 = vld [vmem:[#allocation7 + $0x254] sm:$0xf0] }
  0x52   :  { %v1904_v60 = vor.u32 %v2384_v55, %v1903_v54  ;;  %v1927_v55 = vld [vmem:[#allocation7 + $0x280] sm:$0xf] }
  0x53   :  { %610 = vmatpush.bf16.msrb.mxu2 %v1744_v12 }
  0x54   :  { %623 = vmatpush.bf16.msrb.mxu3 %v1808_v59  ;;  %v1905_v59 = vld [vmem:[#allocation7 + $0x258] sm:$0xf0] }
  0x55   :  { %648 = vmatpush.bf16.msra.mxu1 %v1820_v37  ;;  %635 = vmatpush.bf16.msra.mxu0 %v1756_v3  ;;  %v1980_v37 = vor.u32 %v2401_v30, %v1977_v31  ;;  %v1943_v30 = vld [vmem:[#allocation7 + $0x2a0] sm:$0xf]  ;;  %v2394_v31 = vld [vmem:[#allocation7 + $0x2a4] sm:$0xf0] }
  0x57   :  { %611 = vmatpush.bf16.msrb.mxu2 %v1736_v19  ;;  %v1951_v19 = vld [vmem:[#allocation7 + $0x2b0] sm:$0xf] }
  0x58   :  { %624 = vmatpush.bf16.msrb.mxu3 %v1800_v7  ;;  %v1952_v22 = vor.u32 %v2396_v20, %v1951_v19  ;;  %v2047_v19 = vld [vmem:[#allocation7 + $0x370] sm:$0xf] }
  0x59   :  { %649 = vmatpush.bf16.msra.mxu1 %v1812_v61  ;;  %636 = vmatpush.bf16.msra.mxu0 %v1748_v15  ;;  %v1908_v61 = vor.u32 %v2383_v56, %v1905_v59  ;;  %v2390_v56 = vld [vmem:[#allocation7 + $0x284] sm:$0xf0]  ;;  %v1929_v59 = vld [vmem:[#allocation7 + $0x288] sm:$0xf0] }
  0x5a   :  { %v1928_v58 = vor.u32 %v2390_v56, %v1927_v55 }
  0x5d   :  { %650 = vmatpush.bf16.msra.mxu1 %v1804_v9  ;;  %637 = vmatpush.bf16.msra.mxu0 %v1740_v21  ;;  %v2395_v21 = vld [vmem:[#allocation7 + $0x2b4] sm:$0xf] }
  0x5e   :  { %v1956_v24 = vor.u32 %v2395_v21, %v1953_v23  ;;  %v2420_v21 = vld [vmem:[#allocation7 + $0x374] sm:$0xf0]  ;;  %v2049_v23 = vld [vmem:[#allocation7 + $0x378] sm:$0xf0] }
  0x9d   :  { %v128_v40 = vpop.f32.mrf.mxu0 }
  0x9e   :  { %v129_v42 = vadd.f32 %v128_v40, %v99_v38  ;;  %v1920_v38 = vor.u32 %v2388_v34, %v1919_v32  ;;  %v1967_v40 = vld [vmem:[#allocation7 + $0x2d0] sm:$0xf]  ;;  %v2393_v34 = vld [vmem:[#allocation7 + $0x2a4] sm:$0xf] }
  0x9f   :  { %v141_v41 = vpop.f32.mrf.mxu1 }
  0xa0   :  { %v142_v43 = vadd.f32 %v141_v41, %v100_v39  ;;  %v145_v44 = vmax.f32 %v129_v42, 0.0  ;;  %v1924_v39 = vor.u32 %v2387_v35, %v1921_v36  ;;  %v2400_v41 = vld [vmem:[#allocation7 + $0x2d4] sm:$0xf0]  ;;  %v2399_v42 = vld [vmem:[#allocation7 + $0x2d4] sm:$0xf] }
  0xa1   :  { %v1945_v35 = vld [vmem:[#allocation7 + $0x2a8] sm:$0xf0] }
  0xa2   :  { %v146_v45 = vmax.f32 %v142_v43, 0.0  ;;  %v147_v46 = vpack.c.bf16 %v145_v44, %v145_v44  ;;  %v1969_v43 = vld [vmem:[#allocation7 + $0x2d8] sm:$0xf0]  ;;  %v1911_v44 = vld [vmem:[#allocation7 + $0x260] sm:$0xf]  ;;  %v1948_v36 = vor.u32 %v2393_v34, %v1945_v35 }
  0xa3   :  { %v1972_v53 = vor.u32 %v2399_v42, %v1969_v43  ;;  %v1935_v43 = vld [vmem:[#allocation7 + $0x290] sm:$0xf]  ;;  %v2417_v34 = vld [vmem:[#allocation7 + $0x364] sm:$0xf]  ;;  %v2041_v35 = vld [vmem:[#allocation7 + $0x368] sm:$0xf0] }
  0xa4   :  { %v148_v47 = vpack.c.bf16 %v146_v45, %v146_v45  ;;  %356 = vmatmul.bf16.vlgmr.msra.gmra.mxu2 %v147_v46  ;;  %382 = vmatmul.bf16.vlgmr.msrb.gmra.mxu0 %v147_v46  ;;  %v2386_v45 = vld [vmem:[#allocation7 + $0x264] sm:$0xf0] }
  0xa5   :  { %v130_v48 = vpop.f32.mrf.mxu0  ;;  %860 = vmatpush.bf16.msra.mxu2 %v1920_v38  ;;  %886 = vmatpush.bf16.msrb.mxu0 %v1924_v39  ;;  %v1912_v46 = vor.u32 %v2386_v45, %v1911_v44  ;;  %v2380_v38 = vld [vmem:[#allocation7 + $0x234] sm:$0xf0]  ;;  %v2379_v39 = vld [vmem:[#allocation7 + $0x234] sm:$0xf] }
  0xa6   :  { %369 = vmatmul.bf16.vlgmr.msra.gmra.mxu3 %v148_v47  ;;  %395 = vmatmul.bf16.vlgmr.msrb.gmra.mxu1 %v148_v47  ;;  %v2385_v47 = vld [vmem:[#allocation7 + $0x264] sm:$0xf]  ;;  %v1913_v48 = vld [vmem:[#allocation7 + $0x268] sm:$0xf0]  ;;  %v2392_v44 = vld [vmem:[#allocation7 + $0x294] sm:$0xf0] }
  0xa7   :  { %v143_v49 = vpop.f32.mrf.mxu1  ;;  %873 = vmatpush.bf16.msra.mxu3 %v1984_v25  ;;  %899 = vmatpush.bf16.msrb.mxu1 %v1988_v29  ;;  %v1916_v50 = vor.u32 %v2385_v47, %v1913_v48  ;;  %v1895_v25 = vld [vmem:[#allocation7 + $0x240] sm:$0xf]  ;;  %v1897_v29 = vld [vmem:[#allocation7 + $0x248] sm:$0xf0]  ;;  %v1936_v45 = vor.u32 %v2392_v44, %v1935_v43  ;;  %v1937_v47 = vld [vmem:[#allocation7 + $0x298] sm:$0xf0] }
  0xa8   :  { %v1968_v49 = vor.u32 %v2400_v41, %v1967_v40  ;;  %v1896_v28 = vor.u32 %v2382_v26, %v1895_v25  ;;  %v1900_v32 = vor.u32 %v2381_v27, %v1897_v29  ;;  %v1889_v41 = vld [vmem:[#allocation7 + $0x238] sm:$0xf0]  ;;  %v2048_v25 = vor.u32 %v2420_v21, %v2047_v19  ;;  %v2095_v27 = vld [vmem:[#allocation7 + $0x3d0] sm:$0xf]  ;;  %v2431_v29 = vld [vmem:[#allocation7 + $0x3d4] sm:$0xf] }
  0xa9   :  { %861 = vmatpush.bf16.msra.mxu2 %v1912_v46  ;;  %887 = vmatpush.bf16.msrb.mxu0 %v1916_v50  ;;  %v1892_v42 = vor.u32 %v2379_v39, %v1889_v41  ;;  %v2391_v46 = vld [vmem:[#allocation7 + $0x294] sm:$0xf]  ;;  %v2378_v50 = vld [vmem:[#allocation7 + $0x224] sm:$0xf0]  ;;  %v2031_v41 = vld [vmem:[#allocation7 + $0x350] sm:$0xf] }
  0xaa   :  { %v1940_v48 = vor.u32 %v2391_v46, %v1937_v47  ;;  %v2430_v39 = vld [vmem:[#allocation7 + $0x3c4] sm:$0xf0]  ;;  %v2415_v43 = vld [vmem:[#allocation7 + $0x354] sm:$0xf]  ;;  %v2429_v44 = vld [vmem:[#allocation7 + $0x3c4] sm:$0xf] }
  0xab   :  { %874 = vmatpush.bf16.msra.mxu3 %v1976_v33  ;;  %900 = vmatpush.bf16.msrb.mxu1 %v1980_v37  ;;  %v1944_v33 = vor.u32 %v2394_v31, %v1943_v30  ;;  %v1887_v37 = vld [vmem:[#allocation7 + $0x230] sm:$0xf]  ;;  %v2097_v30 = vld [vmem:[#allocation7 + $0x3d8] sm:$0xf0]  ;;  %v2039_v31 = vld [vmem:[#allocation7 + $0x360] sm:$0xf] }
  0xac   :  { %v1888_v40 = vor.u32 %v2380_v38, %v1887_v37  ;;  %v2044_v37 = vor.u32 %v2417_v34, %v2041_v35  ;;  %v2087_v38 = vld [vmem:[#allocation7 + $0x3c0] sm:$0xf]  ;;  %v2033_v46 = vld [vmem:[#allocation7 + $0x358] sm:$0xf0]  ;;  %v2425_v21 = vld [vmem:[#allocation7 + $0x3a4] sm:$0xf] }
  0xad   :  { %862 = vmatpush.bf16.msra.mxu2 %v1904_v60  ;;  %888 = vmatpush.bf16.msrb.mxu0 %v1908_v61  ;;  %v1932_v60 = vor.u32 %v2389_v57, %v1929_v59  ;;  %v1871_v61 = vld [vmem:[#allocation7 + $0x210] sm:$0xf]  ;;  %v2065_v34 = vld [vmem:[#allocation7 + $0x398] sm:$0xf0] }
  0xaf   :  { %875 = vmatpush.bf16.msra.mxu3 %v1968_v49  ;;  %901 = vmatpush.bf16.msrb.mxu1 %v1972_v53  ;;  %v1879_v49 = vld [vmem:[#allocation7 + $0x220] sm:$0xf]  ;;  %v1881_v53 = vld [vmem:[#allocation7 + $0x228] sm:$0xf0] }
  0xb0   :  { %v1880_v52 = vor.u32 %v2378_v50, %v1879_v49  ;;  %v1884_v54 = vor.u32 %v2377_v51, %v1881_v53  ;;  %v438_v49 = vld [vmem:[#allocation10 + $0x2] ss:$8 sm:$0x3]  ;;  %v2088_v50 = vor.u32 %v2430_v39, %v2087_v38  ;;  %v2409_v38 = vld [vmem:[#allocation7 + $0x324] sm:$0xf] }
  0xb1   :  { %863 = vmatpush.bf16.msra.mxu2 %v1896_v28  ;;  %889 = vmatpush.bf16.msrb.mxu0 %v1900_v32  ;;  %v2432_v28 = vld [vmem:[#allocation7 + $0x3d4] sm:$0xf0]  ;;  %v2418_v32 = vld [vmem:[#allocation7 + $0x364] sm:$0xf0]  ;;  %v441_v53 = vperm.slane %v438_v49, 1  ;;  %v440_v59 = vperm.slane %v438_v49, 0 }
  0xb2   :  { %v2408_v49 = vld [vmem:[#allocation7 + $0x314] sm:$0xf0] }
  0xb3   :  { %876 = vmatpush.bf16.msra.mxu3 %v1960_v62  ;;  %902 = vmatpush.bf16.msrb.mxu1 %v1964_v0  ;;  %v2376_v62 = vld [vmem:[#allocation7 + $0x214] sm:$0xf0]  ;;  %v2375_v0 = vld [vmem:[#allocation7 + $0x214] sm:$0xf] }
  0xb4   :  { %v1872_v63 = vor.u32 %v2376_v62, %v1871_v61 }
  0xb5   :  { %864 = vmatpush.bf16.msra.mxu2 %v1888_v40  ;;  %890 = vmatpush.bf16.msrb.mxu0 %v1892_v42  ;;  %v2100_v40 = vor.u32 %v2431_v29, %v2097_v30  ;;  %v2416_v42 = vld [vmem:[#allocation7 + $0x354] sm:$0xf0]  ;;  %v2063_v30 = vld [vmem:[#allocation7 + $0x390] sm:$0xf] }
  0xb6   :  { %v2032_v47 = vor.u32 %v2416_v42, %v2031_v41  ;;  %v2055_v42 = vld [vmem:[#allocation7 + $0x380] sm:$0xf] }
  0xb7   :  { %877 = vmatpush.bf16.msra.mxu3 %v1952_v22  ;;  %903 = vmatpush.bf16.msrb.mxu1 %v1956_v24  ;;  %v2419_v22 = vld [vmem:[#allocation7 + $0x374] sm:$0xf] }
  0xb8   :  { %v2052_v26 = vor.u32 %v2419_v22, %v2049_v23  ;;  %v2073_v22 = vld [vmem:[#allocation7 + $0x3a8] sm:$0xf0] }
  0xb9   :  { %865 = vmatpush.bf16.msra.mxu2 %v1880_v52  ;;  %891 = vmatpush.bf16.msrb.mxu0 %v1884_v54  ;;  %v2076_v23 = vor.u32 %v2425_v21, %v2073_v22  ;;  %v2449_v21 = vld [vmem:[#allocation7 + $0x464] sm:$0xf]  ;;  %v2169_v22 = vld [vmem:[#allocation7 + $0x468] sm:$0xf0] }
  0xbb   :  { %878 = vmatpush.bf16.msra.mxu3 %v1944_v33  ;;  %904 = vmatpush.bf16.msrb.mxu1 %v1948_v36  ;;  %v2040_v33 = vor.u32 %v2418_v32, %v2039_v31  ;;  %v2096_v36 = vor.u32 %v2432_v28, %v2095_v27  ;;  %v2017_v28 = vld [vmem:[#allocation7 + $0x338] sm:$0xf0]  ;;  %v2424_v31 = vld [vmem:[#allocation7 + $0x394] sm:$0xf0] }
  0xbc   :  { %v2064_v32 = vor.u32 %v2424_v31, %v2063_v30  ;;  %v2447_v30 = vld [vmem:[#allocation7 + $0x454] sm:$0xf]  ;;  %v2461_v31 = vld [vmem:[#allocation7 + $0x4c4] sm:$0xf] }
  0xbd   :  { %866 = vmatpush.bf16.msra.mxu2 %v1872_v63 }
  0xbf   :  { %879 = vmatpush.bf16.msra.mxu3 %v1936_v45  ;;  %905 = vmatpush.bf16.msrb.mxu1 %v1940_v48  ;;  %v2089_v45 = vld [vmem:[#allocation7 + $0x3c8] sm:$0xf0]  ;;  %v2036_v48 = vor.u32 %v2415_v43, %v2033_v46  ;;  %v2422_v43 = vld [vmem:[#allocation7 + $0x384] sm:$0xf0] }
  0xc0   :  { %v2092_v52 = vor.u32 %v2429_v44, %v2089_v45  ;;  %v2421_v44 = vld [vmem:[#allocation7 + $0x384] sm:$0xf]  ;;  %v2056_v45 = vor.u32 %v2422_v43, %v2055_v42  ;;  %v2057_v46 = vld [vmem:[#allocation7 + $0x388] sm:$0xf0] }
  0xc3   :  { %880 = vmatpush.bf16.msra.mxu3 %v1928_v58  ;;  %906 = vmatpush.bf16.msrb.mxu1 %v1932_v60 }
 0x121   :  { %v383_v2 = vpop.f32.mrf.mxu0 }
 0x122   :  { %v384_v4 = vadd.f32 %v383_v2, %v185_v1  ;;  %v1873_v1 = vld [vmem:[#allocation7 + $0x218] sm:$0xf0] }
 0x123   :  { %v396_v3 = vpop.f32.mrf.mxu1  ;;  %v1876_v2 = vor.u32 %v2375_v0, %v1873_v1 }
 0x124   :  { %v397_v6 = vadd.f32 %v396_v3, %v384_v4  ;;  %v1863_v3 = vld [vmem:[#allocation7 + $0x200] sm:$0xf]  ;;  %v2374_v4 = vld [vmem:[#allocation7 + $0x204] sm:$0xf0] }
 0x125   :  { %892 = vmatpush.bf16.msrb.mxu0 %v1876_v2 }
 0x126   :  { %v401_v7 = vmax.f32 %v397_v6, 0.0  ;;  %v1864_v6 = vor.u32 %v2374_v4, %v1863_v3 }
 0x127   :  { %v357_v8 = vpop.f32.mrf.mxu2 }
 0x128   :  { %v358_v10 = vadd.f32 %v357_v8, %v184_v5  ;;  %v403_v11 = vpack.c.bf16 %v401_v7, %v401_v7  ;;  %v2373_v5 = vld [vmem:[#allocation7 + $0x204] sm:$0xf]  ;;  %v1865_v7 = vld [vmem:[#allocation7 + $0x208] sm:$0xf0]  ;;  %867 = vmatpush.bf16.msra.mxu2 %v1864_v6  ;;  %v2079_v6 = vld [vmem:[#allocation7 + $0x3b0] sm:$0xf] }
 0x129   :  { %v370_v9 = vpop.f32.mrf.mxu3  ;;  %v385_v13 = vpop.f32.mrf.mxu0  ;;  %v1868_v8 = vor.u32 %v2373_v5, %v1865_v7  ;;  %v2428_v7 = vld [vmem:[#allocation7 + $0x3b4] sm:$0xf0] }
 0x12a   :  { %v371_v12 = vadd.f32 %v370_v9, %v358_v10  ;;  %625 = vmatmul.bf16.vlgmr.msrb.gmra.mxu3 %v403_v11  ;;  %651 = vmatmul.bf16.vlgmr.msra.gmra.mxu1 %v403_v11  ;;  %v2111_v9 = vld [vmem:[#allocation7 + $0x3f0] sm:$0xf]  ;;  %v2436_v10 = vld [vmem:[#allocation7 + $0x3f4] sm:$0xf0]  ;;  %v2435_v11 = vld [vmem:[#allocation7 + $0x3f4] sm:$0xf] }
 0x12b   :  { %v398_v14 = vpop.f32.mrf.mxu1  ;;  %893 = vmatpush.bf16.msrb.mxu0 %v1868_v8  ;;  %v2113_v13 = vld [vmem:[#allocation7 + $0x3f8] sm:$0xf0]  ;;  %v2427_v8 = vld [vmem:[#allocation7 + $0x3b4] sm:$0xf] }
 0x12c   :  { %v400_v15 = vmax.f32 %v371_v12, 0.0  ;;  %v2112_v12 = vor.u32 %v2436_v10, %v2111_v9  ;;  %v2103_v14 = vld [vmem:[#allocation7 + $0x3e0] sm:$0xf]  ;;  %v2080_v9 = vor.u32 %v2428_v7, %v2079_v6  ;;  %v2081_v10 = vld [vmem:[#allocation7 + $0x3b8] sm:$0xf0] }
 0x12d   :  { %v2175_v6 = vld [vmem:[#allocation7 + $0x470] sm:$0xf] }
 0x12e   :  { %v402_v16 = vpack.c.bf16 %v400_v15, %v400_v15  ;;  %v2434_v15 = vld [vmem:[#allocation7 + $0x3e4] sm:$0xf0]  ;;  %1129 = vmatpush.bf16.msrb.mxu3 %v2112_v12  ;;  %v2023_v12 = vld [vmem:[#allocation7 + $0x340] sm:$0xf] }
 0x12f   :  { %v359_v17 = vpop.f32.mrf.mxu2  ;;  %v2104_v20 = vor.u32 %v2434_v15, %v2103_v14  ;;  %v2413_v14 = vld [vmem:[#allocation7 + $0x344] sm:$0xf] }
 0x130   :  { %612 = vmatmul.bf16.vlgmr.msrb.gmra.mxu2 %v402_v16  ;;  %638 = vmatmul.bf16.vlgmr.msra.gmra.mxu0 %v402_v16  ;;  %v2116_v16 = vor.u32 %v2435_v11, %v2113_v13  ;;  %v2433_v17 = vld [vmem:[#allocation7 + $0x3e4] sm:$0xf]  ;;  %v2084_v11 = vor.u32 %v2427_v8, %v2081_v10  ;;  %v2414_v13 = vld [vmem:[#allocation7 + $0x344] sm:$0xf0]  ;;  %v2452_v8 = vld [vmem:[#allocation7 + $0x474] sm:$0xf0] }
 0x131   :  { %v372_v18 = vpop.f32.mrf.mxu3  ;;  %1116 = vmatpush.bf16.msrb.mxu2 %v2048_v25  ;;  %1142 = vmatpush.bf16.msra.mxu0 %v2052_v26  ;;  %v2024_v15 = vor.u32 %v2414_v13, %v2023_v12  ;;  %v2412_v25 = vld [vmem:[#allocation7 + $0x334] sm:$0xf0]  ;;  %v2411_v26 = vld [vmem:[#allocation7 + $0x334] sm:$0xf]  ;;  %v2177_v10 = vld [vmem:[#allocation7 + $0x478] sm:$0xf0]  ;;  %v2176_v12 = vor.u32 %v2452_v8, %v2175_v6 }
 0x132   :  { %v2105_v18 = vld [vmem:[#allocation7 + $0x3e8] sm:$0xf0]  ;;  %1155 = vmatpush.bf16.msra.mxu1 %v2116_v16  ;;  %1130 = vmatpush.bf16.msrb.mxu3 %v2104_v20  ;;  %v2020_v29 = vor.u32 %v2411_v26, %v2017_v28  ;;  %v2462_v26 = vld [vmem:[#allocation7 + $0x4c4] sm:$0xf0]  ;;  %v2159_v28 = vld [vmem:[#allocation7 + $0x450] sm:$0xf] }
 0x133   :  { %v2108_v24 = vor.u32 %v2433_v17, %v2105_v18  ;;  %v2025_v16 = vld [vmem:[#allocation7 + $0x348] sm:$0xf0]  ;;  %v2071_v17 = vld [vmem:[#allocation7 + $0x3a0] sm:$0xf]  ;;  %v2426_v18 = vld [vmem:[#allocation7 + $0x3a4] sm:$0xf0] }
 0x134   :  { %v2028_v19 = vor.u32 %v2413_v14, %v2025_v16  ;;  %v2072_v20 = vor.u32 %v2426_v18, %v2071_v17  ;;  %v2223_v14 = vld [vmem:[#allocation7 + $0x4d0] sm:$0xf]  ;;  %v2463_v16 = vld [vmem:[#allocation7 + $0x4d4] sm:$0xf]  ;;  %v2225_v17 = vld [vmem:[#allocation7 + $0x4d8] sm:$0xf0] }
 0x135   :  { %1117 = vmatpush.bf16.msrb.mxu2 %v2040_v33  ;;  %1143 = vmatpush.bf16.msra.mxu0 %v2044_v37  ;;  %v2423_v33 = vld [vmem:[#allocation7 + $0x394] sm:$0xf]  ;;  %v2410_v37 = vld [vmem:[#allocation7 + $0x324] sm:$0xf0]  ;;  %v2167_v18 = vld [vmem:[#allocation7 + $0x460] sm:$0xf] }
 0x136   :  { %1156 = vmatpush.bf16.msra.mxu1 %v2108_v24  ;;  %1131 = vmatpush.bf16.msrb.mxu3 %v2096_v36  ;;  %v2015_v24 = vld [vmem:[#allocation7 + $0x330] sm:$0xf]  ;;  %v2068_v35 = vor.u32 %v2423_v33, %v2065_v34  ;;  %v2007_v36 = vld [vmem:[#allocation7 + $0x320] sm:$0xf]  ;;  %v2161_v33 = vld [vmem:[#allocation7 + $0x458] sm:$0xf0] }
 0x137   :  { %v2016_v27 = vor.u32 %v2412_v25, %v2015_v24  ;;  %v2008_v39 = vor.u32 %v2410_v37, %v2007_v36  ;;  %v2172_v24 = vor.u32 %v2449_v21, %v2169_v22  ;;  %v2215_v25 = vld [vmem:[#allocation7 + $0x4c0] sm:$0xf]  ;;  %v2457_v8 = vld [vmem:[#allocation7 + $0x4a4] sm:$0xf]  ;;  %v2193_v21 = vld [vmem:[#allocation7 + $0x498] sm:$0xf0] }
 0x138   :  { %v694_v37 = vld [vmem:[#allocation10 + $0x3] ss:$8 sm:$0x3] }
 0x139   :  { %1118 = vmatpush.bf16.msrb.mxu2 %v2032_v47  ;;  %1144 = vmatpush.bf16.msra.mxu0 %v2036_v48  ;;  %v2060_v47 = vor.u32 %v2421_v44, %v2057_v46  ;;  %v1999_v48 = vld [vmem:[#allocation7 + $0x310] sm:$0xf]  ;;  %v696_v46 = vperm.slane %v694_v37, 0 }
 0x13a   :  { %1157 = vmatpush.bf16.msra.mxu1 %v2100_v40  ;;  %1132 = vmatpush.bf16.msrb.mxu3 %v2088_v50  ;;  %v2009_v40 = vld [vmem:[#allocation7 + $0x328] sm:$0xf0]  ;;  %v2000_v50 = vor.u32 %v2408_v49, %v1999_v48 }
 0x13b   :  { %v2012_v41 = vor.u32 %v2409_v38, %v2009_v40  ;;  %v2216_v38 = vor.u32 %v2462_v26, %v2215_v25  ;;  %v697_v40 = vperm.slane %v694_v37, 1  ;;  %v2441_v25 = vld [vmem:[#allocation7 + $0x424] sm:$0xf] }
 0x13d   :  { %1119 = vmatpush.bf16.msrb.mxu2 %v2024_v15  ;;  %1145 = vmatpush.bf16.msra.mxu0 %v2028_v19  ;;  %v2464_v15 = vld [vmem:[#allocation7 + $0x4d4] sm:$0xf0]  ;;  %v2450_v19 = vld [vmem:[#allocation7 + $0x464] sm:$0xf0] }
 0x13e   :  { %1158 = vmatpush.bf16.msra.mxu1 %v2092_v52  ;;  %1133 = vmatpush.bf16.msrb.mxu3 %v2080_v9  ;;  %v2001_v52 = vld [vmem:[#allocation7 + $0x318] sm:$0xf0]  ;;  %v2451_v9 = vld [vmem:[#allocation7 + $0x474] sm:$0xf] }
 0x13f   :  { %v2180_v13 = vor.u32 %v2451_v9, %v2177_v10  ;;  %v2201_v9 = vld [vmem:[#allocation7 + $0x4a8] sm:$0xf0] }
 0x140   :  { %v2204_v10 = vor.u32 %v2457_v8, %v2201_v9  ;;  %v2480_v9 = vld [vmem:[#allocation8 + $0x58] sm:$0xff] }
 0x141   :  { %1120 = vmatpush.bf16.msrb.mxu2 %v2016_v27  ;;  %1146 = vmatpush.bf16.msra.mxu0 %v2020_v29  ;;  %v2228_v27 = vor.u32 %v2463_v16, %v2225_v17  ;;  %v2448_v29 = vld [vmem:[#allocation7 + $0x454] sm:$0xf0]  ;;  %v2191_v17 = vld [vmem:[#allocation7 + $0x490] sm:$0xf] }
 0x142   :  { %1159 = vmatpush.bf16.msra.mxu1 %v2084_v11  ;;  %1134 = vmatpush.bf16.msrb.mxu3 %v2072_v20  ;;  %v2168_v20 = vor.u32 %v2450_v19, %v2167_v18  ;;  %v2160_v34 = vor.u32 %v2448_v29, %v2159_v28  ;;  %v2456_v18 = vld [vmem:[#allocation7 + $0x494] sm:$0xf0]  ;;  %v2183_v29 = vld [vmem:[#allocation7 + $0x480] sm:$0xf] }
 0x143   :  { %v2192_v19 = vor.u32 %v2456_v18, %v2191_v17  ;;  %v2469_v17 = vld [vmem:[#allocation8] sm:$0xff] }
 0x145   :  { %1121 = vmatpush.bf16.msrb.mxu2 %v2008_v39  ;;  %1147 = vmatpush.bf16.msra.mxu0 %v2012_v41 }
 0x146   :  { %1160 = vmatpush.bf16.msra.mxu1 %v2076_v23  ;;  %1135 = vmatpush.bf16.msrb.mxu3 %v2064_v32  ;;  %v2224_v23 = vor.u32 %v2464_v15, %v2223_v14  ;;  %v2217_v32 = vld [vmem:[#allocation7 + $0x4c8] sm:$0xf0]  ;;  %v2145_v15 = vld [vmem:[#allocation7 + $0x438] sm:$0xf0] }
 0x147   :  { %v2220_v39 = vor.u32 %v2461_v31, %v2217_v32  ;;  %v2453_v31 = vld [vmem:[#allocation7 + $0x484] sm:$0xf] }
 0x149   :  { %1122 = vmatpush.bf16.msrb.mxu2 %v2000_v50 }
 0x14a   :  { %1161 = vmatpush.bf16.msra.mxu1 %v2068_v35  ;;  %1136 = vmatpush.bf16.msrb.mxu3 %v2056_v45  ;;  %v2164_v35 = vor.u32 %v2447_v30, %v2161_v33  ;;  %v2454_v30 = vld [vmem:[#allocation7 + $0x484] sm:$0xf0]  ;;  %v2185_v33 = vld [vmem:[#allocation7 + $0x488] sm:$0xf0] }
 0x14b   :  { %v2184_v32 = vor.u32 %v2454_v30, %v2183_v29 }
 0x14e   :  { %1162 = vmatpush.bf16.msra.mxu1 %v2060_v47 }
 0x1a7   :  { %v652_v51 = vpop.f32.mrf.mxu1 }
 0x1ad   :  { %v639_v54 = vpop.f32.mrf.mxu0  ;;  %v626_v55 = vpop.f32.mrf.mxu3 }
 0x1ae   :  { %v640_v56 = vadd.f32 %v639_v54, %v441_v53  ;;  %v1991_v54 = vld [vmem:[#allocation7 + $0x300] sm:$0xf] }
 0x1af   :  { %v654_v58 = vpop.f32.mrf.mxu1 }
 0x1b0   :  { %v653_v57 = vadd.f32 %v652_v51, %v640_v56  ;;  %v2407_v51 = vld [vmem:[#allocation7 + $0x314] sm:$0xf]  ;;  %v2405_v56 = vld [vmem:[#allocation7 + $0x304] sm:$0xf]  ;;  %v1993_v58 = vld [vmem:[#allocation7 + $0x308] sm:$0xf0] }
 0x1b1   :  { %v2004_v53 = vor.u32 %v2407_v51, %v2001_v52 }
 0x1b2   :  { %v657_v60 = vmax.f32 %v653_v57, 0.0 }
 0x1b3   :  { %v613_v61 = vpop.f32.mrf.mxu2  ;;  %1148 = vmatpush.bf16.msra.mxu0 %v2004_v53 }
 0x1b4   :  { %v659_v62 = vpack.c.bf16 %v657_v60, %v657_v60  ;;  %v614_v63 = vadd.f32 %v613_v61, %v440_v59  ;;  %v1996_v59 = vor.u32 %v2405_v56, %v1993_v58  ;;  %v2239_v60 = vld [vmem:[#allocation7 + $0x4f0] sm:$0xf]  ;;  %v2468_v61 = vld [vmem:[#allocation7 + $0x4f4] sm:$0xf0] }
 0x1b5   :  { %v641_v0 = vpop.f32.mrf.mxu0  ;;  %v628_v2 = vpop.f32.mrf.mxu3  ;;  %v2460_v58 = vld [vmem:[#allocation7 + $0x4b4] sm:$0xf0] }
 0x1b6   :  { %v627_v1 = vadd.f32 %v626_v55, %v614_v63  ;;  %881 = vmatmul.bf16.vlgmr.msra.gmra.mxu3 %v659_v62  ;;  %907 = vmatmul.bf16.vlgmr.msrb.gmra.mxu1 %v659_v62  ;;  %v2406_v55 = vld [vmem:[#allocation7 + $0x304] sm:$0xf0]  ;;  %v2467_v62 = vld [vmem:[#allocation7 + $0x4f4] sm:$0xf]  ;;  %v2240_v63 = vor.u32 %v2468_v61, %v2239_v60  ;;  %v2241_v0 = vld [vmem:[#allocation7 + $0x4f8] sm:$0xf0] }
 0x1b7   :  { %v1992_v57 = vor.u32 %v2406_v55, %v1991_v54  ;;  %1149 = vmatpush.bf16.msra.mxu0 %v1996_v59  ;;  %v2466_v2 = vld [vmem:[#allocation7 + $0x4e4] sm:$0xf0]  ;;  %v2459_v59 = vld [vmem:[#allocation7 + $0x4b4] sm:$0xf]  ;;  %v2209_v61 = vld [vmem:[#allocation7 + $0x4b8] sm:$0xf0] }
 0x1b8   :  { %v656_v3 = vmax.f32 %v627_v1, 0.0  ;;  %v2231_v1 = vld [vmem:[#allocation7 + $0x4e0] sm:$0xf]  ;;  %1385 = vmatpush.bf16.msra.mxu3 %v2240_v63 }
 0x1b9   :  { %1123 = vmatpush.bf16.msrb.mxu2 %v1992_v57  ;;  %v2232_v7 = vor.u32 %v2466_v2, %v2231_v1  ;;  %v2207_v57 = vld [vmem:[#allocation7 + $0x4b0] sm:$0xf]  ;;  %v2151_v63 = vld [vmem:[#allocation7 + $0x440] sm:$0xf]  ;;  %v2445_v1 = vld [vmem:[#allocation7 + $0x444] sm:$0xf] }
 0x1ba   :  { %v658_v4 = vpack.c.bf16 %v656_v3, %v656_v3  ;;  %v2244_v3 = vor.u32 %v2467_v62, %v2241_v0  ;;  %v2208_v60 = vor.u32 %v2460_v58, %v2207_v57  ;;  %v2212_v62 = vor.u32 %v2459_v59, %v2209_v61  ;;  %v2446_v0 = vld [vmem:[#allocation7 + $0x444] sm:$0xf0] }
 0x1bb   :  { %v615_v5 = vpop.f32.mrf.mxu2  ;;  %v2152_v2 = vor.u32 %v2446_v0, %v2151_v63 }
 0x1bc   :  { %868 = vmatmul.bf16.vlgmr.msra.gmra.mxu2 %v658_v4  ;;  %894 = vmatmul.bf16.vlgmr.msrb.gmra.mxu0 %v658_v4  ;;  %v2465_v4 = vld [vmem:[#allocation7 + $0x4e4] sm:$0xf]  ;;  %v2233_v5 = vld [vmem:[#allocation7 + $0x4e8] sm:$0xf0] }
 0x1bd   :  { %1411 = vmatpush.bf16.msrb.mxu1 %v2244_v3  ;;  %v2236_v11 = vor.u32 %v2465_v4, %v2233_v5  ;;  %1372 = vmatpush.bf16.msra.mxu2 %v2176_v12  ;;  %v2153_v3 = vld [vmem:[#allocation7 + $0x448] sm:$0xf0]  ;;  %v2199_v4 = vld [vmem:[#allocation7 + $0x4a0] sm:$0xf]  ;;  %v2458_v5 = vld [vmem:[#allocation7 + $0x4a4] sm:$0xf0] }
 0x1be   :  { %1398 = vmatpush.bf16.msrb.mxu0 %v2180_v13  ;;  %1386 = vmatpush.bf16.msra.mxu3 %v2232_v7  ;;  %v2156_v6 = vor.u32 %v2445_v1, %v2153_v3  ;;  %v2200_v7 = vor.u32 %v2458_v5, %v2199_v4  ;;  %v2444_v12 = vld [vmem:[#allocation7 + $0x434] sm:$0xf0]  ;;  %v2443_v13 = vld [vmem:[#allocation7 + $0x434] sm:$0xf] }
 0x1bf   :  { %v2148_v16 = vor.u32 %v2443_v13, %v2145_v15  ;;  %v2478_v13 = vld [vmem:[#allocation8 + $0x48] sm:$0xff]  ;;  %v2477_v15 = vld [vmem:[#allocation8 + $0x40] sm:$0xff] }
 0x1c1   :  { %1412 = vmatpush.bf16.msrb.mxu1 %v2236_v11  ;;  %1373 = vmatpush.bf16.msra.mxu2 %v2168_v20  ;;  %v2143_v11 = vld [vmem:[#allocation7 + $0x430] sm:$0xf]  ;;  %v2455_v20 = vld [vmem:[#allocation7 + $0x494] sm:$0xf] }
 0x1c2   :  { %1399 = vmatpush.bf16.msrb.mxu0 %v2172_v24  ;;  %1387 = vmatpush.bf16.msra.mxu3 %v2224_v23  ;;  %v2144_v14 = vor.u32 %v2444_v12, %v2143_v11  ;;  %v2196_v22 = vor.u32 %v2455_v20, %v2193_v21  ;;  %v2135_v23 = vld [vmem:[#allocation7 + $0x420] sm:$0xf]  ;;  %v2442_v24 = vld [vmem:[#allocation7 + $0x424] sm:$0xf0]  ;;  %v2479_v11 = vld [vmem:[#allocation8 + $0x50] sm:$0xff] }
 0x1c3   :  { %v2136_v26 = vor.u32 %v2442_v24, %v2135_v23  ;;  %v2472_v12 = vld [vmem:[#allocation8 + $0x18] sm:$0xff] }
 0x1c5   :  { %1413 = vmatpush.bf16.msrb.mxu1 %v2228_v27  ;;  %1374 = vmatpush.bf16.msra.mxu2 %v2160_v34  ;;  %v2137_v27 = vld [vmem:[#allocation7 + $0x428] sm:$0xf0]  ;;  %v2188_v34 = vor.u32 %v2453_v31, %v2185_v33 }
 0x1c6   :  { %1400 = vmatpush.bf16.msrb.mxu0 %v2164_v35  ;;  %1388 = vmatpush.bf16.msra.mxu3 %v2216_v38  ;;  %v2140_v28 = vor.u32 %v2441_v25, %v2137_v27  ;;  %v2127_v35 = vld [vmem:[#allocation7 + $0x410] sm:$0xf]  ;;  %v2439_v38 = vld [vmem:[#allocation7 + $0x414] sm:$0xf] }
 0x1c9   :  { %1414 = vmatpush.bf16.msrb.mxu1 %v2220_v39  ;;  %1375 = vmatpush.bf16.msra.mxu2 %v2152_v2  ;;  %v2129_v39 = vld [vmem:[#allocation7 + $0x418] sm:$0xf0] }
 0x1ca   :  { %1389 = vmatpush.bf16.msra.mxu3 %v2208_v60  ;;  %1401 = vmatpush.bf16.msrb.mxu0 %v2156_v6 }
 0x1cd   :  { %1415 = vmatpush.bf16.msrb.mxu1 %v2212_v62  ;;  %1376 = vmatpush.bf16.msra.mxu2 %v2144_v14  ;;  %v2471_v14 = vld [vmem:[#allocation8 + $0x10] sm:$0xff] }
 0x1ce   :  { %1390 = vmatpush.bf16.msra.mxu3 %v2200_v7  ;;  %1402 = vmatpush.bf16.msrb.mxu0 %v2148_v16  ;;  %v2470_v16 = vld [vmem:[#allocation8 + $0x8] sm:$0xff] }
 0x1d1   :  { %1416 = vmatpush.bf16.msrb.mxu1 %v2204_v10  ;;  %1377 = vmatpush.bf16.msra.mxu2 %v2136_v26  ;;  %v2473_v10 = vld [vmem:[#allocation8 + $0x20] sm:$0xff] }
 0x1d2   :  { %1391 = vmatpush.bf16.msra.mxu3 %v2192_v19  ;;  %1403 = vmatpush.bf16.msrb.mxu0 %v2140_v28  ;;  %v1206_v19 = vld [vmem:[#allocation10 + $0x5] ss:$8 sm:$0x3] }
 0x1d3   :  { %v1209_v20 = vperm.slane %v1206_v19, 1  ;;  %v1208_v26 = vperm.slane %v1206_v19, 0 }
 0x1d5   :  { %1417 = vmatpush.bf16.msrb.mxu1 %v2196_v22 }
 0x1d6   :  { %1392 = vmatpush.bf16.msra.mxu3 %v2184_v32 }
 0x1d9   :  { %1418 = vmatpush.bf16.msrb.mxu1 %v2188_v34 }
 0x233   :  { %v908_v36 = vpop.f32.mrf.mxu1 }
 0x239   :  { %v882_v41 = vpop.f32.mrf.mxu3  ;;  %v895_v42 = vpop.f32.mrf.mxu0 }
 0x23a   :  { %v896_v43 = vadd.f32 %v895_v42, %v697_v40  ;;  %v2132_v40 = vor.u32 %v2439_v38, %v2129_v39  ;;  %v2438_v42 = vld [vmem:[#allocation7 + $0x404] sm:$0xf0]  ;;  %v1460_v38 = vld [vmem:[#allocation10 + $0x6] ss:$0 sm:$0xff] }
 0x23b   :  { %v910_v44 = vpop.f32.mrf.mxu1 }
 0x23c   :  { %v909_v45 = vadd.f32 %v908_v36, %v896_v43  ;;  %v2440_v36 = vld [vmem:[#allocation7 + $0x414] sm:$0xf0]  ;;  %1404 = vmatpush.bf16.msrb.mxu0 %v2132_v40  ;;  %v2437_v43 = vld [vmem:[#allocation7 + $0x404] sm:$0xf] }
 0x23d   :  { %v2128_v37 = vor.u32 %v2440_v36, %v2127_v35 }
 0x23e   :  { %v913_v47 = vmax.f32 %v909_v45, 0.0  ;;  %v2121_v45 = vld [vmem:[#allocation7 + $0x408] sm:$0xf0] }
 0x23f   :  { %v869_v48 = vpop.f32.mrf.mxu2  ;;  %1378 = vmatpush.bf16.msra.mxu2 %v2128_v37 }
 0x240   :  { %v915_v49 = vpack.c.bf16 %v913_v47, %v913_v47  ;;  %v870_v50 = vadd.f32 %v869_v48, %v696_v46  ;;  %v2124_v46 = vor.u32 %v2437_v43, %v2121_v45  ;;  %v2484_v47 = vld [vmem:[#allocation8 + $0x78] sm:$0xff] }
 0x241   :  { %v884_v51 = vpop.f32.mrf.mxu3  ;;  %v897_v52 = vpop.f32.mrf.mxu0  ;;  %v2476_v48 = vld [vmem:[#allocation8 + $0x38] sm:$0xff] }
 0x242   :  { %v883_v53 = vadd.f32 %v882_v41, %v870_v50  ;;  %1137 = vmatmul.bf16.vlgmr.msrb.gmra.mxu3 %v915_v49  ;;  %1163 = vmatmul.bf16.vlgmr.msra.gmra.mxu1 %v915_v49  ;;  %v2119_v41 = vld [vmem:[#allocation7 + $0x400] sm:$0xf]  ;;  %v2483_v49 = vld [vmem:[#allocation8 + $0x70] sm:$0xff]  ;;  %v2482_v51 = vld [vmem:[#allocation8 + $0x68] sm:$0xff] }
 0x243   :  { %v2120_v44 = vor.u32 %v2438_v42, %v2119_v41  ;;  %1405 = vmatpush.bf16.msrb.mxu0 %v2124_v46  ;;  %1570 = vmatpush.bf16.msrb.mxu3 %v2484_v47  ;;  %v2475_v50 = vld [vmem:[#allocation8 + $0x30] sm:$0xff]  ;;  %v2474_v52 = vld [vmem:[#allocation8 + $0x28] sm:$0xff] }
 0x244   :  { %v912_v54 = vmax.f32 %v883_v53, 0.0  ;;  %v2481_v53 = vld [vmem:[#allocation8 + $0x60] sm:$0xff] }
 0x245   :  { %1379 = vmatpush.bf16.msra.mxu2 %v2120_v44 }
 0x246   :  { %v914_v55 = vpack.c.bf16 %v912_v54, %v912_v54 }
 0x247   :  { %v871_v56 = vpop.f32.mrf.mxu2  ;;  %1571 = vmatpush.bf16.msrb.mxu3 %v2483_v49 }
 0x248   :  { %1124 = vmatmul.bf16.vlgmr.msrb.gmra.mxu2 %v914_v55  ;;  %1150 = vmatmul.bf16.vlgmr.msra.gmra.mxu0 %v914_v55  ;;  %v950_v55 = vld [vmem:[#allocation10 + $0x4] ss:$8 sm:$0x3] }
 0x249   :  { %1557 = vmatpush.bf16.msrb.mxu2 %v2476_v48  ;;  %v953_v56 = vperm.slane %v950_v55, 1  ;;  %v952_v62 = vperm.slane %v950_v55, 0 }
 0x24b   :  { %1572 = vmatpush.bf16.msrb.mxu3 %v2482_v51 }
 0x24d   :  { %1558 = vmatpush.bf16.msrb.mxu2 %v2475_v50 }
 0x24f   :  { %1573 = vmatpush.bf16.msrb.mxu3 %v2481_v53 }
 0x251   :  { %1559 = vmatpush.bf16.msrb.mxu2 %v2474_v52 }
 0x253   :  { %1574 = vmatpush.bf16.msrb.mxu3 %v2480_v9 }
 0x255   :  { %1560 = vmatpush.bf16.msrb.mxu2 %v2473_v10 }
 0x257   :  { %1575 = vmatpush.bf16.msrb.mxu3 %v2479_v11 }
 0x259   :  { %1561 = vmatpush.bf16.msrb.mxu2 %v2472_v12 }
 0x25b   :  { %1576 = vmatpush.bf16.msrb.mxu3 %v2478_v13 }
 0x25d   :  { %1562 = vmatpush.bf16.msrb.mxu2 %v2471_v14 }
 0x25f   :  { %1577 = vmatpush.bf16.msrb.mxu3 %v2477_v15 }
 0x261   :  { %1563 = vmatpush.bf16.msrb.mxu2 %v2470_v16 }
 0x265   :  { %1564 = vmatpush.bf16.msrb.mxu2 %v2469_v17 }
 0x2bf   :  { %v1164_v54 = vpop.f32.mrf.mxu1 }
 0x2c5   :  { %v1138_v57 = vpop.f32.mrf.mxu3  ;;  %v1151_v58 = vpop.f32.mrf.mxu0 }
 0x2c6   :  { %v1152_v59 = vadd.f32 %v1151_v58, %v953_v56 }
 0x2c7   :  { %v1166_v60 = vpop.f32.mrf.mxu1 }
 0x2c8   :  { %v1165_v61 = vadd.f32 %v1164_v54, %v1152_v59 }
 0x2ca   :  { %v1169_v63 = vmax.f32 %v1165_v61, 0.0 }
 0x2cb   :  { %v1125_v0 = vpop.f32.mrf.mxu2 }
 0x2cc   :  { %v1171_v1 = vpack.c.bf16 %v1169_v63, %v1169_v63  ;;  %v1126_v2 = vadd.f32 %v1125_v0, %v952_v62 }
 0x2cd   :  { %v1140_v3 = vpop.f32.mrf.mxu3  ;;  %v1153_v4 = vpop.f32.mrf.mxu0 }
 0x2ce   :  { %v1139_v5 = vadd.f32 %v1138_v57, %v1126_v2  ;;  %1393 = vmatmul.bf16.vlgmr.msra.gmra.mxu3 %v1171_v1  ;;  %1419 = vmatmul.bf16.vlgmr.msrb.gmra.mxu1 %v1171_v1 }
 0x2d0   :  { %v1168_v6 = vmax.f32 %v1139_v5, 0.0 }
 0x2d2   :  { %v1170_v7 = vpack.c.bf16 %v1168_v6, %v1168_v6 }
 0x2d3   :  { %v1127_v8 = vpop.f32.mrf.mxu2 }
 0x2d4   :  { %1380 = vmatmul.bf16.vlgmr.msra.gmra.mxu2 %v1170_v7  ;;  %1406 = vmatmul.bf16.vlgmr.msrb.gmra.mxu0 %v1170_v7 }
 0x34b   :  { %v1420_v18 = vpop.f32.mrf.mxu1 }
 0x351   :  { %v1394_v21 = vpop.f32.mrf.mxu3  ;;  %v1407_v22 = vpop.f32.mrf.mxu0 }
 0x352   :  { %v1408_v23 = vadd.f32 %v1407_v22, %v1209_v20 }
 0x353   :  { %v1422_v24 = vpop.f32.mrf.mxu1 }
 0x354   :  { %v1421_v25 = vadd.f32 %v1420_v18, %v1408_v23 }
 0x356   :  { %v1425_v27 = vmax.f32 %v1421_v25, 0.0 }
 0x357   :  { %v1381_v28 = vpop.f32.mrf.mxu2 }
 0x358   :  { %v1427_v29 = vpack.c.bf16 %v1425_v27, %v1425_v27  ;;  %v1382_v30 = vadd.f32 %v1381_v28, %v1208_v26 }
 0x359   :  { %v1396_v31 = vpop.f32.mrf.mxu3  ;;  %v1409_v32 = vpop.f32.mrf.mxu0 }
 0x35a   :  { %v1395_v33 = vadd.f32 %v1394_v21, %v1382_v30  ;;  %1578 = vmatmul.bf16.vlgmr.msrb.gmra.mxu3 %v1427_v29 }
 0x35c   :  { %v1424_v34 = vmax.f32 %v1395_v33, 0.0 }
 0x35e   :  { %v1426_v35 = vpack.c.bf16 %v1424_v34, %v1424_v34 }
 0x35f   :  { %v1383_v36 = vpop.f32.mrf.mxu2 }
 0x360   :  { %1565 = vmatmul.bf16.vlgmr.msrb.gmra.mxu2 %v1426_v35 }
 0x3dd   :  { %v1579_v37 = vpop.f32.mrf.mxu3 }
 0x3e3   :  { %v1566_v39 = vpop.f32.mrf.mxu2 }
 0x3e4   :  { %v1567_v40 = vadd.f32 %v1566_v39, %v1460_v38 }
 0x3e5   :  { %v1581_v41 = vpop.f32.mrf.mxu3 }
 0x3e6   :  { %v1580_v42 = vadd.f32 %v1579_v37, %v1567_v40 }
 0x3e8   :  { %1583 = vst [vmem:[#allocation11] sm:$0xff] %v1580_v42 }
 0x3e9   :  { %1594 = dma.vmem_to_hbm [thread:$0]  %s1590_s4, 128, %s1592_s21, [#allocation4]  }
 0x3eb   :  { %v1568_v43 = vpop.f32.mrf.mxu2 }
 0x3ec   :  { %2645 = dma.done.wait [#allocation4], 128  }
 0x3ed   :  { %2646 = vsyncadd [#allocation4], 4294967168 }
 0x3ee   :  { %1599 = vsyncpa [#allocation3], 1 }
 0x3ef   :  { %1600 = vsyncpa [#allocation6], 1 }
 0x3f0   :  { %1601 = vsyncpa [#allocation9], 1 }
 0x3f1   :  { %1602 = vsyncpa [#allocation4], 1 }

</bundles_post_ra>
